<compile_context>
chip_gen: v6e
topology: v6e:2x2x1
jax: 0.10.0
libtpu: 0.0.40
codegen_flags: <defaults>
</compile_context>

<pallas_src>
import math

import jax
import jax.numpy as jnp
from jax.experimental import pallas as pl
from jax.experimental.pallas import tpu as pltpu

LN_EPS = 1e-5  # torch.nn.LayerNorm default


def _patch_merge_kernel(x_ref, we_ref, wo_ref, b_ref, out_ref):
    # x_ref  : (tile_m, 2, W2, 2C) model dtype; dim 1 = row parity
    #          (even-row slab channels = [x0|x2], odd-row slab = [x1|x3])
    # we_ref : (2C, 2C) gamma-folded W^T rows for the even-row slab
    # wo_ref : (2C, 2C) gamma-folded W^T rows for the odd-row slab
    # b_ref  : (1, 2C)  beta @ W^T (f32)
    # out_ref: (tile_m * W2, 2C)
    tm, _, w2, c2 = x_ref.shape
    rows = tm * w2
    inv_c4 = 1.0 / float(2 * c2)

    xb = x_ref[...]
    # Flatten to 2-D rows while still in the model dtype (halves relayout bytes
    # when W2 is not a sublane multiple), then cast once to f32.
    e = xb[:, 0].reshape(rows, c2).astype(jnp.float32)
    o = xb[:, 1].reshape(rows, c2).astype(jnp.float32)

    # Single-sweep LayerNorm statistics over the full 4C group (both slabs).
    s1 = jnp.sum(e, axis=-1, keepdims=True) + jnp.sum(o, axis=-1, keepdims=True)
    s2 = (jnp.sum(e * e, axis=-1, keepdims=True)
          + jnp.sum(o * o, axis=-1, keepdims=True))
    mean = s1 * inv_c4
    var = jnp.maximum(s2 * inv_c4 - mean * mean, 0.0)   # guard cancellation
    inv = jax.lax.rsqrt(var + LN_EPS)
    shift = mean * inv                                   # (rows, 1)

    # Normalized operands straight in the matmul dtype (gamma/beta are already
    # folded into we/wo/b by the wrapper).
    mm_dt = we_ref.dtype
    lhs_e = (e * inv - shift).astype(mm_dt)
    lhs_o = (o * inv - shift).astype(mm_dt)

    acc = jnp.dot(lhs_e, we_ref[...], preferred_element_type=jnp.float32)
    acc = acc + jnp.dot(lhs_o, wo_ref[...], preferred_element_type=jnp.float32)
    out_ref[...] = (acc + b_ref[...]).astype(out_ref.dtype)


def _buffered_one_supported():
    """Probe BlockSpec(pipeline_mode=pl.Buffered(1)) support (constant-index
    operands don't need double buffering); fall back gracefully if absent."""
    try:
        pl.BlockSpec((8, 128), lambda i: (0, 0), pipeline_mode=pl.Buffered(1))
        return True
    except Exception:
        return False


def patch_merging2d(x, gamma, beta, w_reduction, *, vmem_budget_bytes=None):
    """PatchMerging2D forward.

    x: [B, H, W, C]; gamma/beta: [4C] (LayerNorm affine);
    w_reduction: [2C, 4C] (torch nn.Linear weight, no bias).
    Returns [B, H//2, W//2, 2C].

    Note: gamma is folded into the (possibly bf16) matmul weight in f32 before
    the cast; for bf16/fp16 models this quantizes gamma*W jointly (tiny
    deviation vs. applying gamma separately, well within bf16 tolerance).
    """
    B, H, W, C = x.shape
    if (H % 2) or (W % 2):
        # SHAPE_FIX path of the reference module: crop the trailing odd row/col.
        H, W = (H // 2) * 2, (W // 2) * 2
        x = x[:, :H, :W, :]
    H2, W2 = H // 2, W // 2
    C2 = 2 * C
    M = B * H2           # row-pair index (b, h2), flattened
    n_rows = M * W2      # total output positions

    # Free view (no HBM traffic): [B,H,W,C] -> [M, 2, W2, 2C].
    # dim 1 = row parity; last dim = [even-col channels | odd-col channels].
    xr = x.reshape(M, 2, W2, C2)

    # Matmul operand dtype: bf16 for bf16/fp16 inputs (fp16 is not a native MXU
    # operand on these TPUs), f32 otherwise.  Accumulation is always f32.
    mm_dtype = jnp.bfloat16 if x.dtype in (jnp.bfloat16, jnp.float16) else jnp.float32

    # Fold LN affine + the torch concat-order permutation into W^T.
    # torch order [x0|x1|x2|x3]: x0=(ev,ev), x1=(od,ev), x2=(ev,od), x3=(od,od).
    # Even-row slab carries [x0|x2] -> W^T rows [0:C]+[2C:3C];
    # odd-row  slab carries [x1|x3] -> W^T rows [C:2C]+[3C:4C].
    wt = jnp.transpose(w_reduction).astype(jnp.float32)              # (4C, 2C)
    g = gamma.astype(jnp.float32)
    wt_e = jnp.concatenate([wt[0:C], wt[2 * C:3 * C]], axis=0)
    wt_o = jnp.concatenate([wt[C:2 * C], wt[3 * C:4 * C]], axis=0)
    g_e = jnp.concatenate([g[0:C], g[2 * C:3 * C]])[:, None]
    g_o = jnp.concatenate([g[C:2 * C], g[3 * C:4 * C]])[:, None]
    w_even = (g_e * wt_e).astype(mm_dtype)                           # (2C, 2C)
    w_odd = (g_o * wt_o).astype(mm_dtype)                            # (2C, 2C)
    bias = beta.astype(jnp.float32)[None, :] @ wt                    # (1, 2C) f32

    # ---- generation-aware VMEM budget ---------------------------------------
    itemsize = jnp.dtype(x.dtype).itemsize
    mm_itemsize = jnp.dtype(mm_dtype).itemsize
    try:
        vmem_cap = int(pltpu.get_tpu_info().vmem_capacity_bytes)
    except Exception:
        vmem_cap = 64 * 2**20            # conservative default (v7x per-TC VMEM)
    if vmem_budget_bytes is None:
        # ~32 MiB on 128 MiB parts (v5e/v6e), ~16 MiB on 64 MiB parts (v7x).
        vmem_budget_bytes = max(12 * 2**20, min(vmem_cap // 4, 32 * 2**20))

    # Per row-pair of tile_m:
    #   pipelined input block  (x2 buffers): 2 * 2*W2*C2 * itemsize
    #   pipelined output block (x2 buffers): 2 *   W2*C2 * itemsize
    #   f32 working set (e, o, acc)        : 3 *   W2*C2 * 4
    #   matmul operands in mm dtype        : 2 *   W2*C2 * mm_itemsize
    bytes_per_m = W2 * C2 * (6 * itemsize + 3 * 4 + 2 * mm_itemsize)
    row_align = max(8, 32 // max(1, itemsize))        # sublane tile per dtype
    m_align = row_align // math.gcd(W2, row_align)    # tile_m*W2 % row_align == 0

    def _plan(weight_bufs):
        w_bytes = weight_bufs * (2 * C2 * C2 * mm_itemsize + C2 * 4)
        avail = max(bytes_per_m, vmem_budget_bytes - w_bytes)
        tile_m = max(1, min(M, avail // bytes_per_m))
        # Prefer an even number of balanced steps (>1) so v7x megacore splits
        # the "parallel" axis evenly; harmless on single-TC v5e/v6e.
        steps = pl.cdiv(M, tile_m)
        if steps > 1 and steps % 2:
            steps += 1
        tile_m = pl.cdiv(M, steps)
        if tile_m < M:
            # Align the flattened output rows (tile_m*W2) to the sublane tile,
            # then clamp back to M (a full-extent block is always legal).
            tile_m = ((tile_m + m_align - 1) // m_align) * m_align
            tile_m = min(tile_m, M)
        grid = (pl.cdiv(M, tile_m),)
        # Explicit VMEM limit from the *chosen* tile (+ compiler scratch slack).
        est = w_bytes + tile_m * bytes_per_m + (2 << 20)
        vmem_limit = int(min(vmem_cap * 3 // 4, max(est, 16 << 20)))
        return int(tile_m), grid, vmem_limit

    def _run(single_buffer_consts, tile_m, grid, vmem_limit):
        def const_spec(shape):
            idx = lambda i: (0,) * len(shape)
            if single_buffer_consts:
                # Constant index map -> double buffering is pure VMEM waste.
                return pl.BlockSpec(shape, idx, pipeline_mode=pl.Buffered(1))
            return pl.BlockSpec(shape, idx)

        return pl.pallas_call(
            _patch_merge_kernel,
            out_shape=jax.ShapeDtypeStruct((n_rows, C2), x.dtype),
            grid=grid,
            in_specs=[
                # One contiguous (tile_m, 2, W2, 2C) slab per step.
                pl.BlockSpec((tile_m, 2, W2, C2), lambda i: (i, 0, 0, 0)),
                const_spec((C2, C2)),     # w_even
                const_spec((C2, C2)),     # w_odd
                const_spec((1, C2)),      # fused bias (f32)
            ],
            out_specs=pl.BlockSpec((tile_m * W2, C2), lambda i: (i, 0)),
            compiler_params=pltpu.CompilerParams(
                dimension_semantics=("parallel",),
                vmem_limit_bytes=vmem_limit),
        )(xr, w_even, w_odd, bias)

    single_buffer = _buffered_one_supported()
    tile_m, grid, vmem_limit = _plan(1 if single_buffer else 2)
    try:
        out_flat = _run(single_buffer, tile_m, grid, vmem_limit)
    except Exception:
        if not single_buffer:
            raise
        # Stricter JAX versions: fall back to default double-buffered constants.
        tile_m, grid, vmem_limit = _plan(2)
        out_flat = _run(False, tile_m, grid, vmem_limit)

    # Free reshape back to the module's output layout.
    return out_flat.reshape(B, H2, W2, C2)


def _reference(x, gamma, beta, w_reduction):
    """Pure-JAX reference mirroring the PyTorch forward."""
    x0 = x[:, 0::2, 0::2, :]
    x1 = x[:, 1::2, 0::2, :]
    x2 = x[:, 0::2, 1::2, :]
    x3 = x[:, 1::2, 1::2, :]
    xm = jnp.concatenate([x0, x1, x2, x3], axis=-1).astype(jnp.float32)
    mean = jnp.mean(xm, axis=-1, keepdims=True)
    var = jnp.mean((xm - mean) ** 2, axis=-1, keepdims=True)
    xn = (xm - mean) / jnp.sqrt(var + LN_EPS)
    xn = xn * gamma.astype(jnp.float32) + beta.astype(jnp.float32)
    return jnp.einsum("bhwk,ok->bhwo", xn, w_reduction.astype(jnp.float32))


if __name__ == "__main__":
    key = jax.random.PRNGKey(0)
    B, H, W, C = 2, 16, 16, 4          # dim = C = 4 (small test, NHWC input)
    k_x, k_w, k_g, k_b = jax.random.split(key, 4)

    x = jax.random.normal(k_x, (B, H, W, C), dtype=jnp.float32)
    # Deterministic synthetic parameters with the module __init__ shapes.
    w_reduction = jax.random.normal(k_w, (2 * C, 4 * C), dtype=jnp.float32) * 0.05
    gamma = 1.0 + 0.1 * jax.random.normal(k_g, (4 * C,), dtype=jnp.float32)
    beta = 0.1 * jax.random.normal(k_b, (4 * C,), dtype=jnp.float32)

    out = patch_merging2d(x, gamma, beta, w_reduction)
    out = jax.block_until_ready(out)

    ref = _reference(x, gamma, beta, w_reduction)
    assert out.shape == (B, H // 2, W // 2, 2 * C), out.shape
    err = float(jnp.max(jnp.abs(out - ref)))
    assert err < 1e-4, err
    print("KERNEL_OK")
</pallas_src>

<mosaic_0001>
module attributes {stable_mosaic.version = 11 : i64} {
  func.func @_patch_merge_kernel(%arg0: i32, %arg1: memref<16x2x8x8xf32, #tpu.memory_space<vmem>>, %arg2: memref<8x8xf32, #tpu.memory_space<vmem>>, %arg3: memref<8x8xf32, #tpu.memory_space<vmem>>, %arg4: memref<1x8xf32, #tpu.memory_space<vmem>>, %arg5: memref<128x8xf32, #tpu.memory_space<vmem>>) attributes {dimension_semantics = [#tpu.dimension_semantics<parallel>], iteration_bounds = array<i64: 1>, scalar_prefetch = 0 : i64, scratch_operands = 0 : i64, tpu.core_type = #tpu.core_type<tc>, window_params = [{transform_indices = @transform_0, window_bounds = array<i64: 16, 2, 8, 8>}, {pipeline_mode = #tpu.pipeline_mode<synchronous>, transform_indices = @transform_1, window_bounds = array<i64: 8, 8>}, {pipeline_mode = #tpu.pipeline_mode<synchronous>, transform_indices = @transform_2, window_bounds = array<i64: 8, 8>}, {pipeline_mode = #tpu.pipeline_mode<synchronous>, transform_indices = @transform_3, window_bounds = array<i64: 1, 8>}, {transform_indices = @transform_4, window_bounds = array<i64: 128, 8>}]} {
    %c0 = arith.constant 0 : index
    %c0_0 = arith.constant 0 : index
    %c0_1 = arith.constant 0 : index
    %c0_2 = arith.constant 0 : index
    %0 = vector.load %arg1[%c0, %c0_0, %c0_1, %c0_2] : memref<16x2x8x8xf32, #tpu.memory_space<vmem>>, vector<16x2x8x8xf32>
    %1 = vector.extract_strided_slice %0 {offsets = [0, 0, 0, 0], sizes = [16, 1, 8, 8], strides = [1, 1, 1, 1]} : vector<16x2x8x8xf32> to vector<16x1x8x8xf32>
    %2 = vector.shape_cast %1 : vector<16x1x8x8xf32> to vector<16x8x8xf32>
    %3 = vector.shape_cast %2 : vector<16x8x8xf32> to vector<128x8xf32>
    %4 = vector.extract_strided_slice %0 {offsets = [0, 1, 0, 0], sizes = [16, 1, 8, 8], strides = [1, 1, 1, 1]} : vector<16x2x8x8xf32> to vector<16x1x8x8xf32>
    %5 = vector.shape_cast %4 : vector<16x1x8x8xf32> to vector<16x8x8xf32>
    %6 = vector.shape_cast %5 : vector<16x8x8xf32> to vector<128x8xf32>
    %cst = arith.constant dense<0.000000e+00> : vector<128xf32>
    %7 = vector.multi_reduction <add>, %3, %cst [1] : vector<128x8xf32> to vector<128xf32>
    %8 = vector.shape_cast %7 : vector<128xf32> to vector<128x1xf32>
    %cst_3 = arith.constant dense<0.000000e+00> : vector<128xf32>
    %9 = vector.multi_reduction <add>, %6, %cst_3 [1] : vector<128x8xf32> to vector<128xf32>
    %10 = vector.shape_cast %9 : vector<128xf32> to vector<128x1xf32>
    %11 = arith.addf %8, %10 : vector<128x1xf32>
    %12 = arith.mulf %3, %3 : vector<128x8xf32>
    %cst_4 = arith.constant dense<0.000000e+00> : vector<128xf32>
    %13 = vector.multi_reduction <add>, %12, %cst_4 [1] : vector<128x8xf32> to vector<128xf32>
    %14 = vector.shape_cast %13 : vector<128xf32> to vector<128x1xf32>
    %15 = arith.mulf %6, %6 : vector<128x8xf32>
    %cst_5 = arith.constant dense<0.000000e+00> : vector<128xf32>
    %16 = vector.multi_reduction <add>, %15, %cst_5 [1] : vector<128x8xf32> to vector<128xf32>
    %17 = vector.shape_cast %16 : vector<128xf32> to vector<128x1xf32>
    %18 = arith.addf %14, %17 : vector<128x1xf32>
    %cst_6 = arith.constant 6.250000e-02 : f32
    %19 = vector.broadcast %cst_6 : f32 to vector<128x1xf32>
    %20 = arith.mulf %11, %19 : vector<128x1xf32>
    %cst_7 = arith.constant 6.250000e-02 : f32
    %21 = vector.broadcast %cst_7 : f32 to vector<128x1xf32>
    %22 = arith.mulf %18, %21 : vector<128x1xf32>
    %23 = arith.mulf %20, %20 : vector<128x1xf32>
    %24 = arith.subf %22, %23 : vector<128x1xf32>
    %cst_8 = arith.constant 0.000000e+00 : f32
    %25 = vector.broadcast %cst_8 : f32 to vector<128x1xf32>
    %26 = arith.maximumf %24, %25 : vector<128x1xf32>
    %cst_9 = arith.constant 9.99999974E-6 : f32
    %27 = vector.broadcast %cst_9 : f32 to vector<128x1xf32>
    %28 = arith.addf %26, %27 : vector<128x1xf32>
    %29 = math.rsqrt %28 : vector<128x1xf32>
    %30 = arith.mulf %20, %29 : vector<128x1xf32>
    %31 = vector.broadcast %29 : vector<128x1xf32> to vector<128x8xf32>
    %32 = arith.mulf %3, %31 : vector<128x8xf32>
    %33 = vector.broadcast %30 : vector<128x1xf32> to vector<128x8xf32>
    %34 = arith.subf %32, %33 : vector<128x8xf32>
    %35 = vector.broadcast %29 : vector<128x1xf32> to vector<128x8xf32>
    %36 = arith.mulf %6, %35 : vector<128x8xf32>
    %37 = vector.broadcast %30 : vector<128x1xf32> to vector<128x8xf32>
    %38 = arith.subf %36, %37 : vector<128x8xf32>
    %c0_10 = arith.constant 0 : index
    %c0_11 = arith.constant 0 : index
    %39 = vector.load %arg2[%c0_10, %c0_11] : memref<8x8xf32, #tpu.memory_space<vmem>>, vector<8x8xf32>
    %cst_12 = arith.constant dense<0.000000e+00> : vector<128x8xf32>
    %40 = tpu.matmul %34, %39, %cst_12 {dimension_numbers = #tpu.dot_dimension_numbers<[1], [0], [0], [1], [0, 0, 1, 1], [], []>} : vector<128x8xf32>, vector<8x8xf32>, vector<128x8xf32> -> vector<128x8xf32>
    %c0_13 = arith.constant 0 : index
    %c0_14 = arith.constant 0 : index
    %41 = vector.load %arg3[%c0_13, %c0_14] : memref<8x8xf32, #tpu.memory_space<vmem>>, vector<8x8xf32>
    %cst_15 = arith.constant dense<0.000000e+00> : vector<128x8xf32>
    %42 = tpu.matmul %38, %41, %cst_15 {dimension_numbers = #tpu.dot_dimension_numbers<[1], [0], [0], [1], [0, 0, 1, 1], [], []>} : vector<128x8xf32>, vector<8x8xf32>, vector<128x8xf32> -> vector<128x8xf32>
    %43 = arith.addf %40, %42 : vector<128x8xf32>
    %c0_16 = arith.constant 0 : index
    %c0_17 = arith.constant 0 : index
    %44 = vector.load %arg4[%c0_16, %c0_17] : memref<1x8xf32, #tpu.memory_space<vmem>>, vector<1x8xf32>
    %45 = vector.broadcast %44 : vector<1x8xf32> to vector<128x8xf32>
    %46 = arith.addf %43, %45 : vector<128x8xf32>
    %c0_18 = arith.constant 0 : index
    %c0_19 = arith.constant 0 : index
    %47 = vector.load %arg5[%c0_18, %c0_19] : memref<128x8xf32, #tpu.memory_space<vmem>>, vector<128x8xf32>
    tpu.vector_store %arg5[%c0_18, %c0_19], %46 {strides = array<i32>} : memref<128x8xf32, #tpu.memory_space<vmem>>, vector<128x8xf32>,
    return
  }
  func.func @transform_0(%arg0: i32) -> (i32, i32, i32, i32) {
    %c0_i32 = arith.constant 0 : i32
    %c0_i32_0 = arith.constant 0 : i32
    %c0_i32_1 = arith.constant 0 : i32
    %c0_i32_2 = arith.constant 0 : i32
    return %arg0, %c0_i32, %c0_i32_0, %c0_i32_1 : i32, i32, i32, i32
  }
  func.func @transform_1(%arg0: i32) -> (i32, i32) {
    %c0_i32 = arith.constant 0 : i32
    %c0_i32_0 = arith.constant 0 : i32
    %c0_i32_1 = arith.constant 0 : i32
    return %c0_i32, %c0_i32_0 : i32, i32
  }
  func.func @transform_2(%arg0: i32) -> (i32, i32) {
    %c0_i32 = arith.constant 0 : i32
    %c0_i32_0 = arith.constant 0 : i32
    %c0_i32_1 = arith.constant 0 : i32
    return %c0_i32, %c0_i32_0 : i32, i32
  }
  func.func @transform_3(%arg0: i32) -> (i32, i32) {
    %c0_i32 = arith.constant 0 : i32
    %c0_i32_0 = arith.constant 0 : i32
    %c0_i32_1 = arith.constant 0 : i32
    return %c0_i32, %c0_i32_0 : i32, i32
  }
  func.func @transform_4(%arg0: i32) -> (i32, i32) {
    %c0_i32 = arith.constant 0 : i32
    %c0_i32_0 = arith.constant 0 : i32
    return %arg0, %c0_i32 : i32, i32
  }
}

module attributes {stable_mosaic.version = 11 : i64} {
  func.func @_patch_merge_kernel(%arg0: i32, %arg1: memref<16x2x8x8xf32, #tpu.memory_space<vmem>>, %arg2: memref<8x8xf32, #tpu.memory_space<vmem>>, %arg3: memref<8x8xf32, #tpu.memory_space<vmem>>, %arg4: memref<1x8xf32, #tpu.memory_space<vmem>>, %arg5: memref<128x8xf32, #tpu.memory_space<vmem>>) attributes {dimension_semantics = [#tpu.dimension_semantics<parallel>], iteration_bounds = array<i64: 1>, scalar_prefetch = 0 : i64, scratch_operands = 0 : i64, tpu.core_type = #tpu.core_type<tc>, window_params = [{transform_indices = @transform_0, window_bounds = array<i64: 16, 2, 8, 8>}, {pipeline_mode = #tpu.pipeline_mode<synchronous>, transform_indices = @transform_1, window_bounds = array<i64: 8, 8>}, {pipeline_mode = #tpu.pipeline_mode<synchronous>, transform_indices = @transform_2, window_bounds = array<i64: 8, 8>}, {pipeline_mode = #tpu.pipeline_mode<synchronous>, transform_indices = @transform_3, window_bounds = array<i64: 1, 8>}, {transform_indices = @transform_4, window_bounds = array<i64: 128, 8>}]} {
    %c0 = arith.constant 0 : index
    %c0_0 = arith.constant 0 : index
    %c0_1 = arith.constant 0 : index
    %c0_2 = arith.constant 0 : index
    %0 = vector.load %arg1[%c0, %c0_0, %c0_1, %c0_2] : memref<16x2x8x8xf32, #tpu.memory_space<vmem>>, vector<16x2x8x8xf32>
    %1 = vector.extract_strided_slice %0 {offsets = [0, 0, 0, 0], sizes = [16, 1, 8, 8], strides = [1, 1, 1, 1]} : vector<16x2x8x8xf32> to vector<16x1x8x8xf32>
    %2 = vector.shape_cast %1 : vector<16x1x8x8xf32> to vector<16x8x8xf32>
    %3 = vector.shape_cast %2 : vector<16x8x8xf32> to vector<128x8xf32>
    %4 = vector.extract_strided_slice %0 {offsets = [0, 1, 0, 0], sizes = [16, 1, 8, 8], strides = [1, 1, 1, 1]} : vector<16x2x8x8xf32> to vector<16x1x8x8xf32>
    %5 = vector.shape_cast %4 : vector<16x1x8x8xf32> to vector<16x8x8xf32>
    %6 = vector.shape_cast %5 : vector<16x8x8xf32> to vector<128x8xf32>
    %cst = arith.constant dense<0.000000e+00> : vector<128xf32>
    %7 = vector.multi_reduction <add>, %3, %cst [1] : vector<128x8xf32> to vector<128xf32>
    %8 = vector.shape_cast %7 : vector<128xf32> to vector<128x1xf32>
    %cst_3 = arith.constant dense<0.000000e+00> : vector<128xf32>
    %9 = vector.multi_reduction <add>, %6, %cst_3 [1] : vector<128x8xf32> to vector<128xf32>
    %10 = vector.shape_cast %9 : vector<128xf32> to vector<128x1xf32>
    %11 = arith.addf %8, %10 : vector<128x1xf32>
    %12 = arith.mulf %3, %3 : vector<128x8xf32>
    %cst_4 = arith.constant dense<0.000000e+00> : vector<128xf32>
    %13 = vector.multi_reduction <add>, %12, %cst_4 [1] : vector<128x8xf32> to vector<128xf32>
    %14 = vector.shape_cast %13 : vector<128xf32> to vector<128x1xf32>
    %15 = arith.mulf %6, %6 : vector<128x8xf32>
    %cst_5 = arith.constant dense<0.000000e+00> : vector<128xf32>
    %16 = vector.multi_reduction <add>, %15, %cst_5 [1] : vector<128x8xf32> to vector<128xf32>
    %17 = vector.shape_cast %16 : vector<128xf32> to vector<128x1xf32>
    %18 = arith.addf %14, %17 : vector<128x1xf32>
    %cst_6 = arith.constant 6.250000e-02 : f32
    %19 = vector.broadcast %cst_6 : f32 to vector<128x1xf32>
    %20 = arith.mulf %11, %19 : vector<128x1xf32>
    %cst_7 = arith.constant 6.250000e-02 : f32
    %21 = vector.broadcast %cst_7 : f32 to vector<128x1xf32>
    %22 = arith.mulf %18, %21 : vector<128x1xf32>
    %23 = arith.mulf %20, %20 : vector<128x1xf32>
    %24 = arith.subf %22, %23 : vector<128x1xf32>
    %cst_8 = arith.constant 0.000000e+00 : f32
    %25 = vector.broadcast %cst_8 : f32 to vector<128x1xf32>
    %26 = arith.maximumf %24, %25 : vector<128x1xf32>
    %cst_9 = arith.constant 9.99999974E-6 : f32
    %27 = vector.broadcast %cst_9 : f32 to vector<128x1xf32>
    %28 = arith.addf %26, %27 : vector<128x1xf32>
    %29 = math.rsqrt %28 : vector<128x1xf32>
    %30 = arith.mulf %20, %29 : vector<128x1xf32>
    %31 = vector.broadcast %29 : vector<128x1xf32> to vector<128x8xf32>
    %32 = arith.mulf %3, %31 : vector<128x8xf32>
    %33 = vector.broadcast %30 : vector<128x1xf32> to vector<128x8xf32>
    %34 = arith.subf %32, %33 : vector<128x8xf32>
    %35 = vector.broadcast %29 : vector<128x1xf32> to vector<128x8xf32>
    %36 = arith.mulf %6, %35 : vector<128x8xf32>
    %37 = vector.broadcast %30 : vector<128x1xf32> to vector<128x8xf32>
    %38 = arith.subf %36, %37 : vector<128x8xf32>
    %c0_10 = arith.constant 0 : index
    %c0_11 = arith.constant 0 : index
    %39 = vector.load %arg2[%c0_10, %c0_11] : memref<8x8xf32, #tpu.memory_space<vmem>>, vector<8x8xf32>
    %cst_12 = arith.constant dense<0.000000e+00> : vector<128x8xf32>
    %40 = tpu.matmul %34, %39, %cst_12 {dimension_numbers = #tpu.dot_dimension_numbers<[1], [0], [0], [1], [0, 0, 1, 1], [], []>} : vector<128x8xf32>, vector<8x8xf32>, vector<128x8xf32> -> vector<128x8xf32>
    %c0_13 = arith.constant 0 : index
    %c0_14 = arith.constant 0 : index
    %41 = vector.load %arg3[%c0_13, %c0_14] : memref<8x8xf32, #tpu.memory_space<vmem>>, vector<8x8xf32>
    %cst_15 = arith.constant dense<0.000000e+00> : vector<128x8xf32>
    %42 = tpu.matmul %38, %41, %cst_15 {dimension_numbers = #tpu.dot_dimension_numbers<[1], [0], [0], [1], [0, 0, 1, 1], [], []>} : vector<128x8xf32>, vector<8x8xf32>, vector<128x8xf32> -> vector<128x8xf32>
    %43 = arith.addf %40, %42 : vector<128x8xf32>
    %c0_16 = arith.constant 0 : index
    %c0_17 = arith.constant 0 : index
    %44 = vector.load %arg4[%c0_16, %c0_17] : memref<1x8xf32, #tpu.memory_space<vmem>>, vector<1x8xf32>
    %45 = vector.broadcast %44 : vector<1x8xf32> to vector<128x8xf32>
    %46 = arith.addf %43, %45 : vector<128x8xf32>
    %c0_18 = arith.constant 0 : index
    %c0_19 = arith.constant 0 : index
    %47 = vector.load %arg5[%c0_18, %c0_19] : memref<128x8xf32, #tpu.memory_space<vmem>>, vector<128x8xf32>
    tpu.vector_store %arg5[%c0_18, %c0_19], %46 {strides = array<i32>} : memref<128x8xf32, #tpu.memory_space<vmem>>, vector<128x8xf32>,
    return
  }
  func.func @transform_0(%arg0: i32) -> (i32, i32, i32, i32) {
    %c0_i32 = arith.constant 0 : i32
    %c0_i32_0 = arith.constant 0 : i32
    %c0_i32_1 = arith.constant 0 : i32
    %c0_i32_2 = arith.constant 0 : i32
    return %arg0, %c0_i32, %c0_i32_0, %c0_i32_1 : i32, i32, i32, i32
  }
  func.func @transform_1(%arg0: i32) -> (i32, i32) {
    %c0_i32 = arith.constant 0 : i32
    %c0_i32_0 = arith.constant 0 : i32
    %c0_i32_1 = arith.constant 0 : i32
    return %c0_i32, %c0_i32_0 : i32, i32
  }
  func.func @transform_2(%arg0: i32) -> (i32, i32) {
    %c0_i32 = arith.constant 0 : i32
    %c0_i32_0 = arith.constant 0 : i32
    %c0_i32_1 = arith.constant 0 : i32
    return %c0_i32, %c0_i32_0 : i32, i32
  }
  func.func @transform_3(%arg0: i32) -> (i32, i32) {
    %c0_i32 = arith.constant 0 : i32
    %c0_i32_0 = arith.constant 0 : i32
    %c0_i32_1 = arith.constant 0 : i32
    return %c0_i32, %c0_i32_0 : i32, i32
  }
  func.func @transform_4(%arg0: i32) -> (i32, i32) {
    %c0_i32 = arith.constant 0 : i32
    %c0_i32_0 = arith.constant 0 : i32
    return %arg0, %c0_i32 : i32, i32
  }
}

</mosaic_0001>

<bundles_post_ra>
// kernel: tpu_custom_call.1
= control target key start
LH: loop header
LB: loop body
LE: loop exit
PB: predicated region body
PF: predicated region fallthrough
CT: control target
= control target key end

     0   :  { %vm49_vm0 = vcmask 64512   ;;  %s1635_s0 = inlined_call_operand.vmem [shape: f32[16,2,8,8], index: 0, kind: input, shape index: {}]   ;;  %s1636_s2 = inlined_call_operand.vmem [shape: f32[8,8], index: 2, kind: input, shape index: {}]   ;;  %s1637_s1 = inlined_call_operand.vmem [shape: f32[8,8], index: 1, kind: input, shape index: {}]   ;;  %s1638_s3 = inlined_call_operand.vmem [shape: f32[1,8], index: 3, kind: input, shape index: {}]   ;;  %s1639_s4 = inlined_call_operand.vmem [shape: f32[128,8], index: 4, kind: output, shape index: {}]  }
   0x1   :  { %v1108_v0 = vld [vmem:[%s1635_s0 + $0x10] sm:$0xff]  ;;  %v1113_v1 = vld [vmem:[%s1635_s0] sm:$0xff]  ;;  %v1118_v2 = vld [vmem:[%s1635_s0 + $0x18] sm:$0xff] }
   0x2   :  { %v53_v3 = vsel %vm49_vm0, %v1108_v0, 0.0  ;;  %v50_v4 = vsel %vm49_vm0, %v1113_v1, 0.0  ;;  %v1127_v5 = vld [vmem:[%s1635_s0 + $0x8] sm:$0xff]  ;;  %v101_v6 = vsel %vm49_vm0, %v1118_v2, 0.0  ;;  %v162_v9 = vmul.f32 %v1113_v1, %v1113_v1  ;;  %v1153_v17 = vld [vmem:[%s1635_s0 + $0x20] sm:$0xff]  ;;  %v1162_v20 = vld [vmem:[%s1635_s0 + $0x38] sm:$0xff] }
   0x3   :  { %54 = vadd.xlane.f32.xlu1 %v53_v3  ;;  %51 = vadd.xlane.f32.xlu0 %v50_v4  ;;  %v98_v7 = vsel %vm49_vm0, %v1127_v5, 0.0  ;;  %v226_v8 = vmul.f32 %v1127_v5, %v1127_v5  ;;  %v227_v12 = vmul.f32 %v1118_v2, %v1118_v2  ;;  %v163_v13 = vmul.f32 %v1108_v0, %v1108_v0  ;;  %v1148_v16 = vld [vmem:[%s1635_s0 + $0x28] sm:$0xff]  ;;  %v1167_v21 = vld [vmem:[%s1635_s0 + $0x30] sm:$0xff]  ;;  %v1193_v33 = vld [vmem:[%s1635_s0 + $0x40] sm:$0xff] }
   0x4   :  { %v178_v11 = vsel %vm49_vm0, %v162_v9, 0.0  ;;  %v104_v18 = vsel %vm49_vm0, %v1148_v16, 0.0  ;;  %v56_v19 = vsel %vm49_vm0, %v1153_v17, 0.0  ;;  %v107_v22 = vsel %vm49_vm0, %v1162_v20, 0.0  ;;  %v1188_v32 = vld [vmem:[%s1635_s0 + $0x48] sm:$0xff]  ;;  %v1202_v36 = vld [vmem:[%s1635_s0 + $0x58] sm:$0xff] }
   0x5   :  { %v242_v10 = vsel %vm49_vm0, %v226_v8, 0.0  ;;  %v245_v14 = vsel %vm49_vm0, %v227_v12, 0.0  ;;  %v181_v15 = vsel %vm49_vm0, %v163_v13, 0.0  ;;  %v59_v23 = vsel %vm49_vm0, %v1167_v21, 0.0  ;;  %v1207_v37 = vld [vmem:[%s1635_s0 + $0x50] sm:$0xff]  ;;  %v1228_v48 = vld [vmem:[%s1635_s0 + $0x68] sm:$0xff] }
   0x6   :  { %v228_v24 = vmul.f32 %v1148_v16, %v1148_v16  ;;  %v164_v25 = vmul.f32 %v1153_v17, %v1153_v17  ;;  %v229_v28 = vmul.f32 %v1162_v20, %v1162_v20  ;;  %v165_v29 = vmul.f32 %v1167_v21, %v1167_v21  ;;  %v1233_v49 = vld [vmem:[%s1635_s0 + $0x60] sm:$0xff]  ;;  %v1242_v52 = vld [vmem:[%s1635_s0 + $0x78] sm:$0xff]  ;;  %v1247_v53 = vld [vmem:[%s1635_s0 + $0x70] sm:$0xff] }
   0x7   :  { %102 = vadd.xlane.f32.xlu1 %v101_v6  ;;  %99 = vadd.xlane.f32.xlu0 %v98_v7  ;;  %v110_v34 = vsel %vm49_vm0, %v1188_v32, 0.0  ;;  %v62_v35 = vsel %vm49_vm0, %v1193_v33, 0.0  ;;  %v113_v38 = vsel %vm49_vm0, %v1202_v36, 0.0  ;;  %v65_v39 = vsel %vm49_vm0, %v1207_v37, 0.0  ;;  %v499_v54 = vld [vmem:[%s1636_s2] sm:$0xff]  ;;  %v1274_v6 = vld [vmem:[%s1635_s0 + $0x88] sm:$0xff] }
   0x8   :  { %v248_v26 = vsel %vm49_vm0, %v228_v24, 0.0  ;;  %v184_v27 = vsel %vm49_vm0, %v164_v25, 0.0  ;;  %v251_v30 = vsel %vm49_vm0, %v229_v28, 0.0  ;;  %v187_v31 = vsel %vm49_vm0, %v165_v29, 0.0  ;;  %v498_v55 = vld [vmem:[%s1637_s1] sm:$0xff]  ;;  %996 = vmatprep.subr.mxu0 %v499_v54 }
   0x9   :  { %v230_v40 = vmul.f32 %v1188_v32, %v1188_v32  ;;  %v166_v41 = vmul.f32 %v1193_v33, %v1193_v33  ;;  %v231_v44 = vmul.f32 %v1202_v36, %v1202_v36  ;;  %v167_v45 = vmul.f32 %v1207_v37, %v1207_v37  ;;  %1022 = vmatprep.subr.mxu1 %v498_v55  ;;  %v1279_v7 = vld [vmem:[%s1635_s0 + $0x80] sm:$0xff] }
   0xa   :  { %v116_v50 = vsel %vm49_vm0, %v1228_v48, 0.0  ;;  %v68_v51 = vsel %vm49_vm0, %v1233_v49, 0.0  ;;  %v119_v56 = vsel %vm49_vm0, %v1242_v52, 0.0  ;;  %v71_v57 = vsel %vm49_vm0, %v1247_v53, 0.0  ;;  %997 = vmatpush3.msra.mxu0 %v499_v54  ;;  %1023 = vmatpush3.msra.mxu1 %v498_v55  ;;  %v1368_v54 = vld [vmem:[%s1635_s0 + $0xd8] sm:$0xff]  ;;  %v1373_v55 = vld [vmem:[%s1635_s0 + $0xd0] sm:$0xff] }
   0xb   :  { %243 = vadd.xlane.f32.xlu1 %v242_v10  ;;  %179 = vadd.xlane.f32.xlu0 %v178_v11  ;;  %v254_v42 = vsel %vm49_vm0, %v230_v40, 0.0  ;;  %v190_v43 = vsel %vm49_vm0, %v166_v41, 0.0  ;;  %v257_v46 = vsel %vm49_vm0, %v231_v44, 0.0  ;;  %v193_v47 = vsel %vm49_vm0, %v167_v45, 0.0  ;;  %v1288_v10 = vld [vmem:[%s1635_s0 + $0x98] sm:$0xff]  ;;  %v1293_v11 = vld [vmem:[%s1635_s0 + $0x90] sm:$0xff] }
   0xc   :  { %v232_v58 = vmul.f32 %v1228_v48, %v1228_v48  ;;  %v168_v59 = vmul.f32 %v1233_v49, %v1233_v49  ;;  %v233_v62 = vmul.f32 %v1242_v52, %v1242_v52  ;;  %v169_v63 = vmul.f32 %v1247_v53, %v1247_v53 }
   0xd   :  { %v122_v8 = vsel %vm49_vm0, %v1274_v6, 0.0  ;;  %v74_v9 = vsel %vm49_vm0, %v1279_v7, 0.0  ;;  %v125_v12 = vsel %vm49_vm0, %v1288_v10, 0.0  ;;  %v77_v13 = vsel %vm49_vm0, %v1293_v11, 0.0 }
   0xe   :  { %v260_v60 = vsel %vm49_vm0, %v232_v58, 0.0  ;;  %v196_v61 = vsel %vm49_vm0, %v168_v59, 0.0  ;;  %v263_v3 = vsel %vm49_vm0, %v233_v62, 0.0  ;;  %v199_v4 = vsel %vm49_vm0, %v169_v63, 0.0 }
   0xf   :  { %246 = vadd.xlane.f32.xlu1 %v245_v14  ;;  %182 = vadd.xlane.f32.xlu0 %v181_v15  ;;  %v234_v14 = vmul.f32 %v1274_v6, %v1274_v6  ;;  %v170_v15 = vmul.f32 %v1279_v7, %v1279_v7  ;;  %v239_v62 = vmul.f32 %v1368_v54, %v1368_v54 }
  0x10   :  { %v175_v63 = vmul.f32 %v1373_v55, %v1373_v55 }
  0x13   :  { %105 = vadd.xlane.f32.xlu1 %v104_v18  ;;  %57 = vadd.xlane.f32.xlu0 %v56_v19  ;;  %v266_v18 = vsel %vm49_vm0, %v234_v14, 0.0  ;;  %v202_v19 = vsel %vm49_vm0, %v170_v15, 0.0  ;;  %v1408_v14 = vld [vmem:[%s1635_s0 + $0xf8] sm:$0xff]  ;;  %v1413_v15 = vld [vmem:[%s1635_s0 + $0xf0] sm:$0xff] }
  0x17   :  { %108 = vadd.xlane.f32.xlu1 %v107_v22  ;;  %60 = vadd.xlane.f32.xlu0 %v59_v23  ;;  %v235_v22 = vmul.f32 %v1288_v10, %v1288_v10  ;;  %v171_v23 = vmul.f32 %v1293_v11, %v1293_v11 }
  0x19   :  { %v269_v24 = vsel %vm49_vm0, %v235_v22, 0.0  ;;  %v205_v25 = vsel %vm49_vm0, %v171_v23, 0.0 }
  0x1b   :  { %249 = vadd.xlane.f32.xlu1 %v248_v26  ;;  %185 = vadd.xlane.f32.xlu0 %v184_v27  ;;  %v1314_v26 = vld [vmem:[%s1635_s0 + $0xa8] sm:$0xff]  ;;  %v1319_v27 = vld [vmem:[%s1635_s0 + $0xa0] sm:$0xff] }
  0x1c   :  { %v128_v28 = vsel %vm49_vm0, %v1314_v26, 0.0  ;;  %v80_v29 = vsel %vm49_vm0, %v1319_v27, 0.0 }
  0x1f   :  { %252 = vadd.xlane.f32.xlu1 %v251_v30  ;;  %188 = vadd.xlane.f32.xlu0 %v187_v31  ;;  %v1328_v30 = vld [vmem:[%s1635_s0 + $0xb8] sm:$0xff]  ;;  %v1333_v31 = vld [vmem:[%s1635_s0 + $0xb0] sm:$0xff] }
  0x23   :  { %111 = vadd.xlane.f32.xlu1 %v110_v34  ;;  %63 = vadd.xlane.f32.xlu0 %v62_v35  ;;  %v131_v34 = vsel %vm49_vm0, %v1328_v30, 0.0  ;;  %v83_v35 = vsel %vm49_vm0, %v1333_v31, 0.0 }
  0x27   :  { %114 = vadd.xlane.f32.xlu1 %v113_v38  ;;  %66 = vadd.xlane.f32.xlu0 %v65_v39  ;;  %v236_v38 = vmul.f32 %v1314_v26, %v1314_v26  ;;  %v172_v39 = vmul.f32 %v1319_v27, %v1319_v27 }
  0x29   :  { %v272_v40 = vsel %vm49_vm0, %v236_v38, 0.0  ;;  %v208_v41 = vsel %vm49_vm0, %v172_v39, 0.0 }
  0x2b   :  { %255 = vadd.xlane.f32.xlu1 %v254_v42  ;;  %191 = vadd.xlane.f32.xlu0 %v190_v43  ;;  %v237_v42 = vmul.f32 %v1328_v30, %v1328_v30  ;;  %v173_v43 = vmul.f32 %v1333_v31, %v1333_v31 }
  0x2d   :  { %v275_v44 = vsel %vm49_vm0, %v237_v42, 0.0  ;;  %v211_v45 = vsel %vm49_vm0, %v173_v43, 0.0 }
  0x2f   :  { %258 = vadd.xlane.f32.xlu1 %v257_v46  ;;  %194 = vadd.xlane.f32.xlu0 %v193_v47  ;;  %v1354_v46 = vld [vmem:[%s1635_s0 + $0xc8] sm:$0xff]  ;;  %v1359_v47 = vld [vmem:[%s1635_s0 + $0xc0] sm:$0xff] }
  0x30   :  { %v238_v58 = vmul.f32 %v1354_v46, %v1354_v46  ;;  %v174_v59 = vmul.f32 %v1359_v47, %v1359_v47 }
  0x33   :  { %117 = vadd.xlane.f32.xlu1 %v116_v50  ;;  %69 = vadd.xlane.f32.xlu0 %v68_v51  ;;  %v134_v50 = vsel %vm49_vm0, %v1354_v46, 0.0  ;;  %v86_v51 = vsel %vm49_vm0, %v1359_v47, 0.0 }
  0x37   :  { %120 = vadd.xlane.f32.xlu1 %v119_v56  ;;  %72 = vadd.xlane.f32.xlu0 %v71_v57  ;;  %v137_v56 = vsel %vm49_vm0, %v1368_v54, 0.0  ;;  %v89_v57 = vsel %vm49_vm0, %v1373_v55, 0.0 }
  0x3b   :  { %261 = vadd.xlane.f32.xlu1 %v260_v60  ;;  %197 = vadd.xlane.f32.xlu0 %v196_v61  ;;  %v278_v60 = vsel %vm49_vm0, %v238_v58, 0.0  ;;  %v214_v61 = vsel %vm49_vm0, %v174_v59, 0.0 }
  0x3f   :  { %264 = vadd.xlane.f32.xlu1 %v263_v3  ;;  %200 = vadd.xlane.f32.xlu0 %v199_v4  ;;  %v281_v3 = vsel %vm49_vm0, %v239_v62, 0.0  ;;  %v217_v4 = vsel %vm49_vm0, %v175_v63, 0.0 }
  0x43   :  { %123 = vadd.xlane.f32.xlu1 %v122_v8  ;;  %75 = vadd.xlane.f32.xlu0 %v74_v9  ;;  %v1394_v8 = vld [vmem:[%s1635_s0 + $0xe8] sm:$0xff]  ;;  %v1399_v9 = vld [vmem:[%s1635_s0 + $0xe0] sm:$0xff] }
  0x44   :  { %v240_v22 = vmul.f32 %v1394_v8, %v1394_v8  ;;  %v176_v23 = vmul.f32 %v1399_v9, %v1399_v9 }
  0x47   :  { %126 = vadd.xlane.f32.xlu1 %v125_v12  ;;  %78 = vadd.xlane.f32.xlu0 %v77_v13  ;;  %v140_v12 = vsel %vm49_vm0, %v1394_v8, 0.0  ;;  %v92_v13 = vsel %vm49_vm0, %v1399_v9, 0.0 }
  0x4b   :  { %267 = vadd.xlane.f32.xlu1 %v266_v18  ;;  %203 = vadd.xlane.f32.xlu0 %v202_v19  ;;  %v143_v18 = vsel %vm49_vm0, %v1408_v14, 0.0  ;;  %v95_v19 = vsel %vm49_vm0, %v1413_v15, 0.0 }
  0x4f   :  { %270 = vadd.xlane.f32.xlu1 %v269_v24  ;;  %206 = vadd.xlane.f32.xlu0 %v205_v25  ;;  %v284_v24 = vsel %vm49_vm0, %v240_v22, 0.0  ;;  %v220_v25 = vsel %vm49_vm0, %v176_v23, 0.0 }
  0x53   :  { %129 = vadd.xlane.f32.xlu1 %v128_v28  ;;  %81 = vadd.xlane.f32.xlu0 %v80_v29  ;;  %v241_v28 = vmul.f32 %v1408_v14, %v1408_v14  ;;  %v177_v29 = vmul.f32 %v1413_v15, %v1413_v15 }
  0x57   :  { %132 = vadd.xlane.f32.xlu1 %v131_v34  ;;  %84 = vadd.xlane.f32.xlu0 %v83_v35  ;;  %v287_v34 = vsel %vm49_vm0, %v241_v28, 0.0  ;;  %v223_v35 = vsel %vm49_vm0, %v177_v29, 0.0 }
  0x5b   :  { %273 = vadd.xlane.f32.xlu1 %v272_v40  ;;  %209 = vadd.xlane.f32.xlu0 %v208_v41 }
  0x5f   :  { %276 = vadd.xlane.f32.xlu1 %v275_v44  ;;  %212 = vadd.xlane.f32.xlu0 %v211_v45 }
  0x63   :  { %135 = vadd.xlane.f32.xlu1 %v134_v50  ;;  %87 = vadd.xlane.f32.xlu0 %v86_v51 }
  0x67   :  { %138 = vadd.xlane.f32.xlu1 %v137_v56  ;;  %90 = vadd.xlane.f32.xlu0 %v89_v57 }
  0x6b   :  { %279 = vadd.xlane.f32.xlu1 %v278_v60  ;;  %215 = vadd.xlane.f32.xlu0 %v214_v61 }
  0x6f   :  { %282 = vadd.xlane.f32.xlu1 %v281_v3  ;;  %218 = vadd.xlane.f32.xlu0 %v217_v4 }
  0x73   :  { %141 = vadd.xlane.f32.xlu1 %v140_v12  ;;  %93 = vadd.xlane.f32.xlu0 %v92_v13 }
  0x77   :  { %144 = vadd.xlane.f32.xlu1 %v143_v18  ;;  %96 = vadd.xlane.f32.xlu0 %v95_v19 }
  0x7b   :  { %285 = vadd.xlane.f32.xlu1 %v284_v24  ;;  %221 = vadd.xlane.f32.xlu0 %v220_v25 }
  0x7f   :  { %288 = vadd.xlane.f32.xlu1 %v287_v34  ;;  %224 = vadd.xlane.f32.xlu0 %v223_v35 }
  0x8c   :  { %v55_v38 = vpop.xlane.xlu1 %54  ;;  %v52_v39 = vpop.xlane.xlu0 %51 }
  0x90   :  { %v103_v40 = vpop.xlane.xlu1 %102  ;;  %v100_v41 = vpop.xlane.xlu0 %99 }
  0x91   :  { %v146_v42 = vadd.f32 %v100_v41, %v52_v39  ;;  %v147_v43 = vadd.f32 %v103_v40, %v55_v38 }
  0x93   :  { %v306_v44 = vmul.f32 0.0625, %v146_v42  ;;  %v307_v56 = vmul.f32 0.0625, %v147_v43 }
  0x94   :  { %v244_v45 = vpop.xlane.xlu1 %243  ;;  %v180_v50 = vpop.xlane.xlu0 %179 }
  0x95   :  { %v290_v51 = vadd.f32 %v244_v45, %v180_v50  ;;  %v338_v57 = vmul.f32 %v306_v44, %v306_v44  ;;  %v339_v63 = vmul.f32 %v307_v56, %v307_v56 }
  0x97   :  { %v322_v58 = vmul.f32 0.0625, %v290_v51 }
  0x98   :  { %v247_v59 = vpop.xlane.xlu1 %246  ;;  %v183_v60 = vpop.xlane.xlu0 %182 }
  0x99   :  { %v354_v61 = vsub.f32 %v322_v58, %v338_v57  ;;  %v291_v62 = vadd.f32 %v247_v59, %v183_v60 }
  0x9b   :  { %v370_v3 = vmax.f32 %v354_v61, 0.0  ;;  %v323_v4 = vmul.f32 0.0625, %v291_v62 }
  0x9c   :  { %v106_v12 = vpop.xlane.xlu1 %105  ;;  %v58_v13 = vpop.xlane.xlu0 %57 }
  0x9d   :  { %v386_v18 = vadd.f32 1e-05, %v370_v3  ;;  %v355_v19 = vsub.f32 %v323_v4, %v339_v63  ;;  %v148_v23 = vadd.f32 %v106_v12, %v58_v13 }
  0x9f   :  { %1048 = vrsqrt.f32 %v386_v18  ;;  %v371_v22 = vmax.f32 %v355_v19, 0.0  ;;  %v308_v29 = vmul.f32 0.0625, %v148_v23 }
  0xa0   :  { %v109_v24 = vpop.xlane.xlu1 %108  ;;  %v61_v25 = vpop.xlane.xlu0 %60 }
  0xa1   :  { %v387_v28 = vadd.f32 1e-05, %v371_v22  ;;  %v149_v34 = vadd.f32 %v109_v24, %v61_v25  ;;  %v340_v40 = vmul.f32 %v308_v29, %v308_v29 }
  0xa3   :  { %1050 = vrsqrt.f32 %v387_v28  ;;  %v1431_v41 = vmul.f32 0.0625, %v149_v34 }
  0xa4   :  { %v250_v35 = vpop.xlane.xlu1 %249  ;;  %v186_v38 = vpop.xlane.xlu0 %185 }
  0xa5   :  { %v292_v39 = vadd.f32 %v250_v35, %v186_v38  ;;  %v341_v57 = vmul.f32 %v1431_v41, %v1431_v41 }
  0xa7   :  { %v324_v42 = vmul.f32 0.0625, %v292_v39 }
  0xa8   :  { %v253_v43 = vpop.xlane.xlu1 %252  ;;  %v189_v45 = vpop.xlane.xlu0 %188 }
  0xa9   :  { %v356_v50 = vsub.f32 %v324_v42, %v340_v40  ;;  %v293_v51 = vadd.f32 %v253_v43, %v189_v45 }
  0xab   :  { %v372_v58 = vmax.f32 %v356_v50, 0.0  ;;  %v325_v59 = vmul.f32 0.0625, %v293_v51 }
  0xac   :  { %v1049_v60 = vpop.eup %1048  ;;  %v112_v61 = vpop.xlane.xlu1 %111 }
  0xad   :  { %v64_v62 = vpop.xlane.xlu0 %63  ;;  %v388_v63 = vadd.f32 1e-05, %v372_v58  ;;  %v357_v3 = vsub.f32 %v325_v59, %v341_v57  ;;  %v418_v4 = vmul.f32 %v1049_v60, %v306_v44  ;;  %v466_v12 = vmul.f32 %v1049_v60, %v1127_v5 }
  0xae   :  { %v434_v13 = vmul.f32 %v1049_v60, %v1113_v1  ;;  %v150_v19 = vadd.f32 %v112_v61, %v64_v62 }
  0xaf   :  { %1052 = vrsqrt.f32 %v388_v63  ;;  %v373_v18 = vmax.f32 %v357_v3, 0.0  ;;  %v482_v25 = vsub.f32 %v466_v12, %v418_v4 }
  0xb0   :  { %v1051_v22 = vpop.eup %1050  ;;  %v115_v23 = vpop.xlane.xlu1 %114  ;;  %v450_v28 = vsub.f32 %v434_v13, %v418_v4  ;;  %v1441_v1 = vmul.f32 0.0625, %v150_v19 }
  0xb1   :  { %v67_v24 = vpop.xlane.xlu0 %66  ;;  %v389_v34 = vadd.f32 1e-05, %v373_v18  ;;  %v419_v35 = vmul.f32 %v1051_v22, %v307_v56  ;;  %998 = vmatprep.mubr.msk.f32.mxu0 %vm49_vm0, %v482_v25  ;;  %v467_v44 = vmul.f32 %v1051_v22, %v1118_v2  ;;  %v435_v5 = vmul.f32 %v1051_v22, %v1108_v0 }
  0xb2   :  { %1024 = vmatprep.mubr.msk.f32.mxu1 %vm49_vm0, %v450_v28  ;;  %v151_v38 = vadd.f32 %v115_v23, %v67_v24  ;;  %v342_v56 = vmul.f32 %v1441_v1, %v1441_v1 }
  0xb3   :  { %1054 = vrsqrt.f32 %v389_v34  ;;  %v483_v42 = vsub.f32 %v467_v44, %v419_v35  ;;  %v451_v43 = vsub.f32 %v435_v5, %v419_v35 }
  0xb4   :  { %v256_v39 = vpop.xlane.xlu1 %255  ;;  %v1447_v50 = vmul.f32 0.0625, %v151_v38 }
  0xb5   :  { %v192_v40 = vpop.xlane.xlu0 %191  ;;  %999 = vmatmul.mubr.msk.f32.vlgmr.msra.gmra.mxu0 %vm49_vm0, %v483_v42  ;;  %1025 = vmatmul.mubr.msk.f32.vlgmr.msra.gmra.mxu1 %vm49_vm0, %v451_v43 }
  0xb6   :  { %v294_v45 = vadd.f32 %v256_v39, %v192_v40  ;;  %v343_v59 = vmul.f32 %v1447_v50, %v1447_v50 }
  0xb8   :  { %v326_v2 = vmul.f32 0.0625, %v294_v45  ;;  %v259_v0 = vpop.xlane.xlu1 %258 }
  0xb9   :  { %v195_v51 = vpop.xlane.xlu0 %194 }
  0xba   :  { %v358_v57 = vsub.f32 %v326_v2, %v342_v56  ;;  %v295_v58 = vadd.f32 %v259_v0, %v195_v51 }
  0xbc   :  { %v374_v60 = vmax.f32 %v358_v57, 0.0  ;;  %v327_v61 = vmul.f32 0.0625, %v295_v58  ;;  %v1053_v62 = vpop.eup %1052  ;;  %v118_v63 = vpop.xlane.xlu1 %117 }
  0xbd   :  { %v70_v3 = vpop.xlane.xlu0 %69  ;;  %v420_v13 = vmul.f32 %v1053_v62, %v308_v29  ;;  %v468_v18 = vmul.f32 %v1053_v62, %v1148_v16  ;;  %v436_v19 = vmul.f32 %v1053_v62, %v1153_v17 }
  0xbe   :  { %v390_v4 = vadd.f32 1e-05, %v374_v60  ;;  %v359_v12 = vsub.f32 %v327_v61, %v343_v59  ;;  %v152_v23 = vadd.f32 %v118_v63, %v70_v3 }
  0xbf   :  { %v484_v34 = vsub.f32 %v468_v18, %v420_v13  ;;  %v452_v35 = vsub.f32 %v436_v19, %v420_v13 }
  0xc0   :  { %1056 = vrsqrt.f32 %v390_v4  ;;  %v375_v22 = vmax.f32 %v359_v12, 0.0  ;;  %v1055_v24 = vpop.eup %1054  ;;  %v121_v25 = vpop.xlane.xlu1 %120  ;;  %v1458_v17 = vmul.f32 0.0625, %v152_v23 }
  0xc1   :  { %v73_v28 = vpop.xlane.xlu0 %72  ;;  %v421_v5 = vmul.f32 %v1055_v24, %v1431_v41  ;;  %1001 = vmatprep.mubr.msk.f32.mxu0 %vm49_vm0, %v484_v34  ;;  %1027 = vmatprep.mubr.msk.f32.mxu1 %vm49_vm0, %v452_v35  ;;  %v469_v29 = vmul.f32 %v1055_v24, %v1162_v20  ;;  %v437_v16 = vmul.f32 %v1055_v24, %v1167_v21 }
  0xc2   :  { %v391_v44 = vadd.f32 1e-05, %v375_v22  ;;  %v153_v38 = vadd.f32 %v121_v25, %v73_v28  ;;  %v344_v41 = vmul.f32 %v1458_v17, %v1458_v17 }
  0xc3   :  { %v485_v42 = vsub.f32 %v469_v29, %v421_v5  ;;  %v453_v43 = vsub.f32 %v437_v16, %v421_v5 }
  0xc4   :  { %1058 = vrsqrt.f32 %v391_v44  ;;  %v262_v39 = vpop.xlane.xlu1 %261  ;;  %v1464_v56 = vmul.f32 0.0625, %v153_v38 }
  0xc5   :  { %v198_v40 = vpop.xlane.xlu0 %197  ;;  %1002 = vmatmul.mubr.msk.f32.gmra.mxu0 %vm49_vm0, %v485_v42  ;;  %1028 = vmatmul.mubr.msk.f32.gmra.mxu1 %vm49_vm0, %v453_v43 }
  0xc6   :  { %v296_v45 = vadd.f32 %v262_v39, %v198_v40  ;;  %v345_v57 = vmul.f32 %v1464_v56, %v1464_v56 }
  0xc8   :  { %v328_v20 = vmul.f32 0.0625, %v296_v45  ;;  %v265_v21 = vpop.xlane.xlu1 %264 }
  0xc9   :  { %v201_v2 = vpop.xlane.xlu0 %200 }
  0xca   :  { %v360_v0 = vsub.f32 %v328_v20, %v344_v41  ;;  %v297_v51 = vadd.f32 %v265_v21, %v201_v2 }
  0xcc   :  { %v376_v58 = vmax.f32 %v360_v0, 0.0  ;;  %v329_v59 = vmul.f32 0.0625, %v297_v51  ;;  %v124_v61 = vpop.xlane.xlu1 %123 }
  0xcd   :  { %v1057_v60 = vpop.eup %1056  ;;  %v76_v62 = vpop.xlane.xlu0 %75 }
  0xce   :  { %v392_v63 = vadd.f32 1e-05, %v376_v58  ;;  %v361_v3 = vsub.f32 %v329_v59, %v345_v57  ;;  %v422_v4 = vmul.f32 %v1057_v60, %v1441_v1  ;;  %v470_v12 = vmul.f32 %v1057_v60, %v1188_v32 }
  0xcf   :  { %v438_v13 = vmul.f32 %v1057_v60, %v1193_v33  ;;  %v154_v19 = vadd.f32 %v124_v61, %v76_v62 }
  0xd0   :  { %1060 = vrsqrt.f32 %v392_v63  ;;  %v377_v18 = vmax.f32 %v361_v3, 0.0  ;;  %v127_v23 = vpop.xlane.xlu1 %126  ;;  %v486_v25 = vsub.f32 %v470_v12, %v422_v4 }
  0xd1   :  { %v1059_v22 = vpop.eup %1058  ;;  %v79_v24 = vpop.xlane.xlu0 %78  ;;  %v454_v28 = vsub.f32 %v438_v13, %v422_v4  ;;  %v1476_v33 = vmul.f32 0.0625, %v154_v19 }
  0xd2   :  { %v393_v34 = vadd.f32 1e-05, %v377_v18  ;;  %v423_v35 = vmul.f32 %v1059_v22, %v1447_v50  ;;  %1004 = vmatprep.mubr.msk.f32.mxu0 %vm49_vm0, %v486_v25  ;;  %v471_v1 = vmul.f32 %v1059_v22, %v1202_v36  ;;  %v439_v32 = vmul.f32 %v1059_v22, %v1207_v37 }
  0xd3   :  { %1030 = vmatprep.mubr.msk.f32.mxu1 %vm49_vm0, %v454_v28  ;;  %v155_v44 = vadd.f32 %v127_v23, %v79_v24  ;;  %v346_v50 = vmul.f32 %v1476_v33, %v1476_v33 }
  0xd4   :  { %1062 = vrsqrt.f32 %v393_v34  ;;  %v268_v5 = vpop.xlane.xlu1 %267  ;;  %v487_v16 = vsub.f32 %v471_v1, %v423_v35  ;;  %v455_v38 = vsub.f32 %v439_v32, %v423_v35 }
  0xd5   :  { %v204_v29 = vpop.xlane.xlu0 %203  ;;  %v1482_v40 = vmul.f32 0.0625, %v155_v44 }
  0xd6   :  { %v298_v39 = vadd.f32 %v268_v5, %v204_v29  ;;  %1005 = vmatmul.mubr.msk.f32.gmra.mxu0 %vm49_vm0, %v487_v16  ;;  %1031 = vmatmul.mubr.msk.f32.gmra.mxu1 %vm49_vm0, %v455_v38 }
  0xd7   :  { %v347_v41 = vmul.f32 %v1482_v40, %v1482_v40 }
  0xd8   :  { %v330_v36 = vmul.f32 0.0625, %v298_v39  ;;  %v271_v37 = vpop.xlane.xlu1 %270 }
  0xd9   :  { %v207_v42 = vpop.xlane.xlu0 %206 }
  0xda   :  { %v362_v43 = vsub.f32 %v330_v36, %v346_v50  ;;  %v299_v45 = vadd.f32 %v271_v37, %v207_v42 }
  0xdc   :  { %v378_v20 = vmax.f32 %v362_v43, 0.0  ;;  %v331_v21 = vmul.f32 0.0625, %v299_v45  ;;  %v130_v0 = vpop.xlane.xlu1 %129 }
  0xdd   :  { %v1061_v2 = vpop.eup %1060  ;;  %v82_v51 = vpop.xlane.xlu0 %81 }
  0xde   :  { %v394_v57 = vadd.f32 1e-05, %v378_v20  ;;  %v363_v58 = vsub.f32 %v331_v21, %v347_v41  ;;  %v424_v59 = vmul.f32 %v1061_v2, %v1458_v17  ;;  %v472_v60 = vmul.f32 %v1061_v2, %v1228_v48 }
  0xdf   :  { %v440_v61 = vmul.f32 %v1061_v2, %v1233_v49  ;;  %v156_v63 = vadd.f32 %v130_v0, %v82_v51 }
  0xe0   :  { %1064 = vrsqrt.f32 %v394_v57  ;;  %v379_v62 = vmax.f32 %v363_v58, 0.0  ;;  %v133_v4 = vpop.xlane.xlu1 %132  ;;  %v488_v13 = vsub.f32 %v472_v60, %v424_v59 }
  0xe1   :  { %v1063_v3 = vpop.eup %1062  ;;  %v85_v12 = vpop.xlane.xlu0 %84  ;;  %v456_v18 = vsub.f32 %v440_v61, %v424_v59  ;;  %v1494_v49 = vmul.f32 0.0625, %v156_v63 }
  0xe2   :  { %v395_v19 = vadd.f32 1e-05, %v379_v62  ;;  %v425_v22 = vmul.f32 %v1063_v3, %v1464_v56  ;;  %1007 = vmatprep.mubr.msk.f32.mxu0 %vm49_vm0, %v488_v13  ;;  %v473_v17 = vmul.f32 %v1063_v3, %v1242_v52  ;;  %v441_v48 = vmul.f32 %v1063_v3, %v1247_v53 }
  0xe3   :  { %1033 = vmatprep.mubr.msk.f32.mxu1 %vm49_vm0, %v456_v18  ;;  %v157_v23 = vadd.f32 %v133_v4, %v85_v12  ;;  %v348_v56 = vmul.f32 %v1494_v49, %v1494_v49 }
  0xe4   :  { %1066 = vrsqrt.f32 %v395_v19  ;;  %v274_v24 = vpop.xlane.xlu1 %273  ;;  %v489_v28 = vsub.f32 %v473_v17, %v425_v22  ;;  %v457_v34 = vsub.f32 %v441_v48, %v425_v22 }
  0xe5   :  { %v210_v25 = vpop.xlane.xlu0 %209  ;;  %v1500_v1 = vmul.f32 0.0625, %v157_v23 }
  0xe6   :  { %v300_v35 = vadd.f32 %v274_v24, %v210_v25  ;;  %1008 = vmatmul.mubr.msk.f32.gmra.mxu0 %vm49_vm0, %v489_v28  ;;  %1034 = vmatmul.mubr.msk.f32.gmra.mxu1 %vm49_vm0, %v457_v34 }
  0xe7   :  { %v349_v29 = vmul.f32 %v1500_v1, %v1500_v1 }
  0xe8   :  { %v332_v52 = vmul.f32 0.0625, %v300_v35  ;;  %v277_v53 = vpop.xlane.xlu1 %276 }
  0xe9   :  { %v213_v32 = vpop.xlane.xlu0 %212 }
  0xea   :  { %v364_v44 = vsub.f32 %v332_v52, %v348_v56  ;;  %v301_v5 = vadd.f32 %v277_v53, %v213_v32 }
  0xec   :  { %v380_v16 = vmax.f32 %v364_v44, 0.0  ;;  %v333_v38 = vmul.f32 0.0625, %v301_v5  ;;  %v136_v50 = vpop.xlane.xlu1 %135 }
  0xed   :  { %v1065_v39 = vpop.eup %1064  ;;  %v88_v36 = vpop.xlane.xlu0 %87 }
  0xee   :  { %v396_v37 = vadd.f32 1e-05, %v380_v16  ;;  %v365_v42 = vsub.f32 %v333_v38, %v349_v29  ;;  %v426_v43 = vmul.f32 %v1065_v39, %v1476_v33  ;;  %v474_v45 = vmul.f32 %v1065_v39, %v1274_v6 }
  0xef   :  { %v442_v41 = vmul.f32 %v1065_v39, %v1279_v7  ;;  %v158_v21 = vadd.f32 %v136_v50, %v88_v36 }
  0xf0   :  { %1068 = vrsqrt.f32 %v396_v37  ;;  %v381_v20 = vmax.f32 %v365_v42, 0.0  ;;  %v139_v0 = vpop.xlane.xlu1 %138  ;;  %v490_v57 = vsub.f32 %v474_v45, %v426_v43 }
  0xf1   :  { %v1067_v2 = vpop.eup %1066  ;;  %v91_v51 = vpop.xlane.xlu0 %90  ;;  %v458_v58 = vsub.f32 %v442_v41, %v426_v43  ;;  %v1512_v7 = vmul.f32 0.0625, %v158_v21 }
  0xf2   :  { %v397_v59 = vadd.f32 1e-05, %v381_v20  ;;  %v427_v60 = vmul.f32 %v1067_v2, %v1482_v40  ;;  %1010 = vmatprep.mubr.msk.f32.mxu0 %vm49_vm0, %v490_v57  ;;  %v475_v33 = vmul.f32 %v1067_v2, %v1288_v10  ;;  %v443_v6 = vmul.f32 %v1067_v2, %v1293_v11 }
  0xf3   :  { %1036 = vmatprep.mubr.msk.f32.mxu1 %vm49_vm0, %v458_v58  ;;  %v159_v61 = vadd.f32 %v139_v0, %v91_v51  ;;  %v350_v40 = vmul.f32 %v1512_v7, %v1512_v7 }
  0xf4   :  { %1070 = vrsqrt.f32 %v397_v59  ;;  %v280_v62 = vpop.xlane.xlu1 %279  ;;  %v491_v3 = vsub.f32 %v475_v33, %v427_v60  ;;  %v459_v4 = vsub.f32 %v443_v6, %v427_v60 }
  0xf5   :  { %v216_v63 = vpop.xlane.xlu0 %215  ;;  %v1518_v13 = vmul.f32 0.0625, %v159_v61 }
  0xf6   :  { %v302_v12 = vadd.f32 %v280_v62, %v216_v63  ;;  %1011 = vmatmul.mubr.msk.f32.gmra.mxu0 %vm49_vm0, %v491_v3  ;;  %1037 = vmatmul.mubr.msk.f32.gmra.mxu1 %vm49_vm0, %v459_v4 }
  0xf7   :  { %v351_v17 = vmul.f32 %v1518_v13, %v1518_v13 }
  0xf8   :  { %v334_v10 = vmul.f32 0.0625, %v302_v12  ;;  %v283_v11 = vpop.xlane.xlu1 %282 }
  0xf9   :  { %v219_v18 = vpop.xlane.xlu0 %218 }
  0xfa   :  { %v366_v19 = vsub.f32 %v334_v10, %v350_v40  ;;  %v303_v22 = vadd.f32 %v283_v11, %v219_v18 }
  0xfc   :  { %v382_v48 = vmax.f32 %v366_v19, 0.0  ;;  %v335_v23 = vmul.f32 0.0625, %v303_v22  ;;  %v142_v25 = vpop.xlane.xlu1 %141 }
  0xfd   :  { %v1069_v24 = vpop.eup %1068  ;;  %v94_v28 = vpop.xlane.xlu0 %93 }
  0xfe   :  { %v398_v34 = vadd.f32 1e-05, %v382_v48  ;;  %v367_v35 = vsub.f32 %v335_v23, %v351_v17  ;;  %v428_v56 = vmul.f32 %v1069_v24, %v1494_v49  ;;  %v476_v52 = vmul.f32 %v1069_v24, %v1314_v26 }
  0xff   :  { %v444_v53 = vmul.f32 %v1069_v24, %v1319_v27  ;;  %v160_v44 = vadd.f32 %v142_v25, %v94_v28 }
 0x100   :  { %1072 = vrsqrt.f32 %v398_v34  ;;  %v383_v32 = vmax.f32 %v367_v35, 0.0  ;;  %v145_v29 = vpop.xlane.xlu1 %144  ;;  %v492_v38 = vsub.f32 %v476_v52, %v428_v56  ;;  %v1553_v35 = vld [vmem:[%s1638_s3] ss:$0 sm:$0xff] }
 0x101   :  { %v1071_v5 = vpop.eup %1070  ;;  %v97_v16 = vpop.xlane.xlu0 %96  ;;  %v460_v39 = vsub.f32 %v444_v53, %v428_v56  ;;  %v320_v27 = vmul.f32 0.0625, %v160_v44 }
 0x102   :  { %v399_v50 = vadd.f32 1e-05, %v383_v32  ;;  %v429_v36 = vmul.f32 %v1071_v5, %v1500_v1  ;;  %1013 = vmatprep.mubr.msk.f32.mxu0 %vm49_vm0, %v492_v38  ;;  %v477_v49 = vmul.f32 %v1071_v5, %v1328_v30  ;;  %v445_v26 = vmul.f32 %v1071_v5, %v1333_v31 }
 0x103   :  { %1039 = vmatprep.mubr.msk.f32.mxu1 %vm49_vm0, %v460_v39  ;;  %v161_v37 = vadd.f32 %v145_v29, %v97_v16  ;;  %v352_v1 = vmul.f32 %v320_v27, %v320_v27 }
 0x104   :  { %1074 = vrsqrt.f32 %v399_v50  ;;  %v286_v42 = vpop.xlane.xlu1 %285  ;;  %v493_v45 = vsub.f32 %v477_v49, %v429_v36  ;;  %v461_v41 = vsub.f32 %v445_v26, %v429_v36 }
 0x105   :  { %v222_v43 = vpop.xlane.xlu0 %221  ;;  %v321_v21 = vmul.f32 0.0625, %v161_v37 }
 0x106   :  { %v304_v20 = vadd.f32 %v286_v42, %v222_v43  ;;  %1014 = vmatmul.mubr.msk.f32.gmra.mxu0 %vm49_vm0, %v493_v45  ;;  %1040 = vmatmul.mubr.msk.f32.gmra.mxu1 %vm49_vm0, %v461_v41 }
 0x107   :  { %v353_v31 = vmul.f32 %v321_v21, %v321_v21 }
 0x108   :  { %v336_v2 = vmul.f32 0.0625, %v304_v20  ;;  %v289_v0 = vpop.xlane.xlu1 %288 }
 0x109   :  { %v225_v51 = vpop.xlane.xlu0 %224 }
 0x10a   :  { %v368_v30 = vsub.f32 %v336_v2, %v352_v1  ;;  %v305_v57 = vadd.f32 %v289_v0, %v225_v51 }
 0x10c   :  { %v384_v58 = vmax.f32 %v368_v30, 0.0  ;;  %v337_v59 = vmul.f32 0.0625, %v305_v57 }
 0x10d   :  { %v1073_v60 = vpop.eup %1072 }
 0x10e   :  { %v400_v33 = vadd.f32 1e-05, %v384_v58  ;;  %v369_v6 = vsub.f32 %v337_v59, %v353_v31  ;;  %v430_v61 = vmul.f32 %v1073_v60, %v1512_v7  ;;  %v478_v62 = vmul.f32 %v1073_v60, %v1354_v46 }
 0x10f   :  { %v446_v63 = vmul.f32 %v1073_v60, %v1359_v47 }
 0x110   :  { %1076 = vrsqrt.f32 %v400_v33  ;;  %v385_v3 = vmax.f32 %v369_v6, 0.0  ;;  %v494_v4 = vsub.f32 %v478_v62, %v430_v61 }
 0x111   :  { %v1075_v12 = vpop.eup %1074  ;;  %v462_v40 = vsub.f32 %v446_v63, %v430_v61 }
 0x112   :  { %v401_v10 = vadd.f32 1e-05, %v385_v3  ;;  %1016 = vmatprep.mubr.msk.f32.mxu0 %vm49_vm0, %v494_v4  ;;  %v431_v11 = vmul.f32 %v1075_v12, %v1518_v13  ;;  %v479_v18 = vmul.f32 %v1075_v12, %v1368_v54  ;;  %v447_v19 = vmul.f32 %v1075_v12, %v1373_v55 }
 0x113   :  { %1042 = vmatprep.mubr.msk.f32.mxu1 %vm49_vm0, %v462_v40 }
 0x114   :  { %1078 = vrsqrt.f32 %v401_v10  ;;  %v495_v46 = vsub.f32 %v479_v18, %v431_v11  ;;  %v463_v7 = vsub.f32 %v447_v19, %v431_v11 }
 0x116   :  { %1017 = vmatmul.mubr.msk.f32.gmra.mxu0 %vm49_vm0, %v495_v46  ;;  %1043 = vmatmul.mubr.msk.f32.gmra.mxu1 %vm49_vm0, %v463_v7 }
 0x11d   :  { %v1077_v47 = vpop.eup %1076 }
 0x11e   :  { %v432_v22 = vmul.f32 %v1077_v47, %v320_v27  ;;  %v480_v17 = vmul.f32 %v1077_v47, %v1394_v8  ;;  %v448_v48 = vmul.f32 %v1077_v47, %v1399_v9 }
 0x120   :  { %v496_v13 = vsub.f32 %v480_v17, %v432_v22  ;;  %v464_v23 = vsub.f32 %v448_v48, %v432_v22 }
 0x121   :  { %v1079_v54 = vpop.eup %1078 }
 0x122   :  { %1019 = vmatprep.mubr.msk.f32.mxu0 %vm49_vm0, %v496_v13  ;;  %1045 = vmatprep.mubr.msk.f32.mxu1 %vm49_vm0, %v464_v23  ;;  %v433_v55 = vmul.f32 %v1079_v54, %v321_v21  ;;  %v481_v24 = vmul.f32 %v1079_v54, %v1408_v14  ;;  %v449_v25 = vmul.f32 %v1079_v54, %v1413_v15 }
 0x124   :  { %v497_v28 = vsub.f32 %v481_v24, %v433_v55  ;;  %v465_v34 = vsub.f32 %v449_v25, %v433_v55 }
 0x126   :  { %1020 = vmatmul.mubr.msk.f32.gmra.mxu0 %vm49_vm0, %v497_v28  ;;  %1046 = vmatmul.mubr.msk.f32.gmra.mxu1 %vm49_vm0, %v465_v34 }
 0x175   :  { %v1000_v8 = vpop.f32.mrf.mxu0  ;;  %v1026_v9 = vpop.f32.mrf.mxu1 }
 0x176   :  { %v813_v56 = vadd.f32 %v1026_v9, %v1000_v8 }
 0x177   :  { %v614_v52 = vpop.f32.mrf.mxu0  ;;  %v807_v53 = vpop.f32.mrf.mxu1 }
 0x178   :  { %v894_v14 = vadd.f32 %v1553_v35, %v813_v56  ;;  %v808_v32 = vadd.f32 %v807_v53, %v614_v52 }
 0x17a   :  { %910 = vst.msk [vmem:[%s1639_s4 + $0x8] sm:$0xff] %vm49_vm0, %v894_v14  ;;  %v893_v15 = vadd.f32 %v1553_v35, %v808_v32 }
 0x17c   :  { %909 = vst.msk [vmem:[%s1639_s4] sm:$0xff] %vm49_vm0, %v893_v15 }
 0x185   :  { %v1003_v44 = vpop.f32.mrf.mxu0  ;;  %v1029_v5 = vpop.f32.mrf.mxu1 }
 0x186   :  { %v823_v29 = vadd.f32 %v1029_v5, %v1003_v44 }
 0x187   :  { %v624_v16 = vpop.f32.mrf.mxu0  ;;  %v817_v38 = vpop.f32.mrf.mxu1 }
 0x188   :  { %v896_v39 = vadd.f32 %v1553_v35, %v823_v29  ;;  %v818_v50 = vadd.f32 %v817_v38, %v624_v16 }
 0x18a   :  { %912 = vst.msk [vmem:[%s1639_s4 + $0x18] sm:$0xff] %vm49_vm0, %v896_v39  ;;  %v895_v36 = vadd.f32 %v1553_v35, %v818_v50 }
 0x18c   :  { %911 = vst.msk [vmem:[%s1639_s4 + $0x10] sm:$0xff] %vm49_vm0, %v895_v36 }
 0x196   :  { %v1006_v49 = vpop.f32.mrf.mxu0  ;;  %v1032_v26 = vpop.f32.mrf.mxu1 }
 0x197   :  { %v833_v27 = vadd.f32 %v1032_v26, %v1006_v49 }
 0x198   :  { %v634_v37 = vpop.f32.mrf.mxu0  ;;  %v827_v42 = vpop.f32.mrf.mxu1 }
 0x199   :  { %v898_v43 = vadd.f32 %v1553_v35, %v833_v27  ;;  %v828_v45 = vadd.f32 %v827_v42, %v634_v37 }
 0x19b   :  { %914 = vst.msk [vmem:[%s1639_s4 + $0x28] sm:$0xff] %vm49_vm0, %v898_v43  ;;  %v897_v41 = vadd.f32 %v1553_v35, %v828_v45 }
 0x19d   :  { %913 = vst.msk [vmem:[%s1639_s4 + $0x20] sm:$0xff] %vm49_vm0, %v897_v41 }
 0x1a6   :  { %v1009_v20 = vpop.f32.mrf.mxu0  ;;  %v1035_v1 = vpop.f32.mrf.mxu1 }
 0x1a7   :  { %v843_v21 = vadd.f32 %v1035_v1, %v1009_v20 }
 0x1a8   :  { %v644_v2 = vpop.f32.mrf.mxu0  ;;  %v837_v0 = vpop.f32.mrf.mxu1 }
 0x1a9   :  { %v900_v51 = vadd.f32 %v1553_v35, %v843_v21  ;;  %v838_v30 = vadd.f32 %v837_v0, %v644_v2 }
 0x1ab   :  { %916 = vst.msk [vmem:[%s1639_s4 + $0x38] sm:$0xff] %vm49_vm0, %v900_v51  ;;  %v899_v57 = vadd.f32 %v1553_v35, %v838_v30 }
 0x1ad   :  { %915 = vst.msk [vmem:[%s1639_s4 + $0x30] sm:$0xff] %vm49_vm0, %v899_v57 }
 0x1b6   :  { %v1012_v31 = vpop.f32.mrf.mxu0  ;;  %v1038_v58 = vpop.f32.mrf.mxu1 }
 0x1b7   :  { %v853_v59 = vadd.f32 %v1038_v58, %v1012_v31 }
 0x1b8   :  { %v654_v60 = vpop.f32.mrf.mxu0  ;;  %v847_v33 = vpop.f32.mrf.mxu1 }
 0x1b9   :  { %v902_v6 = vadd.f32 %v1553_v35, %v853_v59  ;;  %v848_v61 = vadd.f32 %v847_v33, %v654_v60 }
 0x1bb   :  { %918 = vst.msk [vmem:[%s1639_s4 + $0x48] sm:$0xff] %vm49_vm0, %v902_v6  ;;  %v901_v62 = vadd.f32 %v1553_v35, %v848_v61 }
 0x1bd   :  { %917 = vst.msk [vmem:[%s1639_s4 + $0x40] sm:$0xff] %vm49_vm0, %v901_v62 }
 0x1c6   :  { %v1015_v63 = vpop.f32.mrf.mxu0  ;;  %v1041_v3 = vpop.f32.mrf.mxu1 }
 0x1c7   :  { %v863_v4 = vadd.f32 %v1041_v3, %v1015_v63 }
 0x1c8   :  { %v664_v12 = vpop.f32.mrf.mxu0  ;;  %v857_v40 = vpop.f32.mrf.mxu1 }
 0x1c9   :  { %v904_v10 = vadd.f32 %v1553_v35, %v863_v4  ;;  %v858_v11 = vadd.f32 %v857_v40, %v664_v12 }
 0x1cb   :  { %920 = vst.msk [vmem:[%s1639_s4 + $0x58] sm:$0xff] %vm49_vm0, %v904_v10  ;;  %v903_v18 = vadd.f32 %v1553_v35, %v858_v11 }
 0x1cd   :  { %919 = vst.msk [vmem:[%s1639_s4 + $0x50] sm:$0xff] %vm49_vm0, %v903_v18 }
 0x1d6   :  { %v1018_v19 = vpop.f32.mrf.mxu0  ;;  %v1044_v46 = vpop.f32.mrf.mxu1 }
 0x1d7   :  { %v873_v7 = vadd.f32 %v1044_v46, %v1018_v19 }
 0x1d8   :  { %v674_v47 = vpop.f32.mrf.mxu0  ;;  %v867_v22 = vpop.f32.mrf.mxu1 }
 0x1d9   :  { %v906_v17 = vadd.f32 %v1553_v35, %v873_v7  ;;  %v868_v48 = vadd.f32 %v867_v22, %v674_v47 }
 0x1db   :  { %922 = vst.msk [vmem:[%s1639_s4 + $0x68] sm:$0xff] %vm49_vm0, %v906_v17  ;;  %v905_v13 = vadd.f32 %v1553_v35, %v868_v48 }
 0x1dd   :  { %921 = vst.msk [vmem:[%s1639_s4 + $0x60] sm:$0xff] %vm49_vm0, %v905_v13 }
 0x1e6   :  { %v1021_v23 = vpop.f32.mrf.mxu0  ;;  %v1047_v54 = vpop.f32.mrf.mxu1 }
 0x1e7   :  { %v883_v55 = vadd.f32 %v1047_v54, %v1021_v23 }
 0x1e8   :  { %v684_v24 = vpop.f32.mrf.mxu0  ;;  %v877_v25 = vpop.f32.mrf.mxu1 }
 0x1e9   :  { %v908_v28 = vadd.f32 %v1553_v35, %v883_v55  ;;  %v878_v34 = vadd.f32 %v877_v25, %v684_v24 }
 0x1eb   :  { %924 = vst.msk [vmem:[%s1639_s4 + $0x78] sm:$0xff] %vm49_vm0, %v908_v28  ;;  %v907_v8 = vadd.f32 %v1553_v35, %v878_v34 }
 0x1ed   :  { %923 = vst.msk [vmem:[%s1639_s4 + $0x70] sm:$0xff] %vm49_vm0, %v907_v8 }

// kernel: tpu_custom_call.1
= control target key start
LH: loop header
LB: loop body
LE: loop exit
PB: predicated region body
PF: predicated region fallthrough
CT: control target
= control target key end

     0   :  { %vm49_vm0 = vcmask 64512   ;;  %s1635_s0 = inlined_call_operand.vmem [shape: f32[16,2,8,8], index: 0, kind: input, shape index: {}]   ;;  %s1636_s2 = inlined_call_operand.vmem [shape: f32[8,8], index: 2, kind: input, shape index: {}]   ;;  %s1637_s1 = inlined_call_operand.vmem [shape: f32[8,8], index: 1, kind: input, shape index: {}]   ;;  %s1638_s3 = inlined_call_operand.vmem [shape: f32[1,8], index: 3, kind: input, shape index: {}]   ;;  %s1639_s4 = inlined_call_operand.vmem [shape: f32[128,8], index: 4, kind: output, shape index: {}]  }
   0x1   :  { %v1108_v0 = vld [vmem:[%s1635_s0 + $0x10] sm:$0xff]  ;;  %v1113_v1 = vld [vmem:[%s1635_s0] sm:$0xff]  ;;  %v1118_v2 = vld [vmem:[%s1635_s0 + $0x18] sm:$0xff] }
   0x2   :  { %v53_v3 = vsel %vm49_vm0, %v1108_v0, 0.0  ;;  %v50_v4 = vsel %vm49_vm0, %v1113_v1, 0.0  ;;  %v1127_v5 = vld [vmem:[%s1635_s0 + $0x8] sm:$0xff]  ;;  %v101_v6 = vsel %vm49_vm0, %v1118_v2, 0.0  ;;  %v162_v9 = vmul.f32 %v1113_v1, %v1113_v1  ;;  %v1153_v17 = vld [vmem:[%s1635_s0 + $0x20] sm:$0xff]  ;;  %v1162_v20 = vld [vmem:[%s1635_s0 + $0x38] sm:$0xff] }
   0x3   :  { %54 = vadd.xlane.f32.xlu1 %v53_v3  ;;  %51 = vadd.xlane.f32.xlu0 %v50_v4  ;;  %v98_v7 = vsel %vm49_vm0, %v1127_v5, 0.0  ;;  %v226_v8 = vmul.f32 %v1127_v5, %v1127_v5  ;;  %v227_v12 = vmul.f32 %v1118_v2, %v1118_v2  ;;  %v163_v13 = vmul.f32 %v1108_v0, %v1108_v0  ;;  %v1148_v16 = vld [vmem:[%s1635_s0 + $0x28] sm:$0xff]  ;;  %v1167_v21 = vld [vmem:[%s1635_s0 + $0x30] sm:$0xff]  ;;  %v1193_v33 = vld [vmem:[%s1635_s0 + $0x40] sm:$0xff] }
   0x4   :  { %v178_v11 = vsel %vm49_vm0, %v162_v9, 0.0  ;;  %v104_v18 = vsel %vm49_vm0, %v1148_v16, 0.0  ;;  %v56_v19 = vsel %vm49_vm0, %v1153_v17, 0.0  ;;  %v107_v22 = vsel %vm49_vm0, %v1162_v20, 0.0  ;;  %v1188_v32 = vld [vmem:[%s1635_s0 + $0x48] sm:$0xff]  ;;  %v1202_v36 = vld [vmem:[%s1635_s0 + $0x58] sm:$0xff] }
   0x5   :  { %v242_v10 = vsel %vm49_vm0, %v226_v8, 0.0  ;;  %v245_v14 = vsel %vm49_vm0, %v227_v12, 0.0  ;;  %v181_v15 = vsel %vm49_vm0, %v163_v13, 0.0  ;;  %v59_v23 = vsel %vm49_vm0, %v1167_v21, 0.0  ;;  %v1207_v37 = vld [vmem:[%s1635_s0 + $0x50] sm:$0xff]  ;;  %v1228_v48 = vld [vmem:[%s1635_s0 + $0x68] sm:$0xff] }
   0x6   :  { %v228_v24 = vmul.f32 %v1148_v16, %v1148_v16  ;;  %v164_v25 = vmul.f32 %v1153_v17, %v1153_v17  ;;  %v229_v28 = vmul.f32 %v1162_v20, %v1162_v20  ;;  %v165_v29 = vmul.f32 %v1167_v21, %v1167_v21  ;;  %v1233_v49 = vld [vmem:[%s1635_s0 + $0x60] sm:$0xff]  ;;  %v1242_v52 = vld [vmem:[%s1635_s0 + $0x78] sm:$0xff]  ;;  %v1247_v53 = vld [vmem:[%s1635_s0 + $0x70] sm:$0xff] }
   0x7   :  { %102 = vadd.xlane.f32.xlu1 %v101_v6  ;;  %99 = vadd.xlane.f32.xlu0 %v98_v7  ;;  %v110_v34 = vsel %vm49_vm0, %v1188_v32, 0.0  ;;  %v62_v35 = vsel %vm49_vm0, %v1193_v33, 0.0  ;;  %v113_v38 = vsel %vm49_vm0, %v1202_v36, 0.0  ;;  %v65_v39 = vsel %vm49_vm0, %v1207_v37, 0.0  ;;  %v499_v54 = vld [vmem:[%s1636_s2] sm:$0xff]  ;;  %v1274_v6 = vld [vmem:[%s1635_s0 + $0x88] sm:$0xff] }
   0x8   :  { %v248_v26 = vsel %vm49_vm0, %v228_v24, 0.0  ;;  %v184_v27 = vsel %vm49_vm0, %v164_v25, 0.0  ;;  %v251_v30 = vsel %vm49_vm0, %v229_v28, 0.0  ;;  %v187_v31 = vsel %vm49_vm0, %v165_v29, 0.0  ;;  %v498_v55 = vld [vmem:[%s1637_s1] sm:$0xff]  ;;  %996 = vmatprep.subr.mxu0 %v499_v54 }
   0x9   :  { %v230_v40 = vmul.f32 %v1188_v32, %v1188_v32  ;;  %v166_v41 = vmul.f32 %v1193_v33, %v1193_v33  ;;  %v231_v44 = vmul.f32 %v1202_v36, %v1202_v36  ;;  %v167_v45 = vmul.f32 %v1207_v37, %v1207_v37  ;;  %1022 = vmatprep.subr.mxu1 %v498_v55  ;;  %v1279_v7 = vld [vmem:[%s1635_s0 + $0x80] sm:$0xff] }
   0xa   :  { %v116_v50 = vsel %vm49_vm0, %v1228_v48, 0.0  ;;  %v68_v51 = vsel %vm49_vm0, %v1233_v49, 0.0  ;;  %v119_v56 = vsel %vm49_vm0, %v1242_v52, 0.0  ;;  %v71_v57 = vsel %vm49_vm0, %v1247_v53, 0.0  ;;  %997 = vmatpush3.msra.mxu0 %v499_v54  ;;  %1023 = vmatpush3.msra.mxu1 %v498_v55  ;;  %v1368_v54 = vld [vmem:[%s1635_s0 + $0xd8] sm:$0xff]  ;;  %v1373_v55 = vld [vmem:[%s1635_s0 + $0xd0] sm:$0xff] }
   0xb   :  { %243 = vadd.xlane.f32.xlu1 %v242_v10  ;;  %179 = vadd.xlane.f32.xlu0 %v178_v11  ;;  %v254_v42 = vsel %vm49_vm0, %v230_v40, 0.0  ;;  %v190_v43 = vsel %vm49_vm0, %v166_v41, 0.0  ;;  %v257_v46 = vsel %vm49_vm0, %v231_v44, 0.0  ;;  %v193_v47 = vsel %vm49_vm0, %v167_v45, 0.0  ;;  %v1288_v10 = vld [vmem:[%s1635_s0 + $0x98] sm:$0xff]  ;;  %v1293_v11 = vld [vmem:[%s1635_s0 + $0x90] sm:$0xff] }
   0xc   :  { %v232_v58 = vmul.f32 %v1228_v48, %v1228_v48  ;;  %v168_v59 = vmul.f32 %v1233_v49, %v1233_v49  ;;  %v233_v62 = vmul.f32 %v1242_v52, %v1242_v52  ;;  %v169_v63 = vmul.f32 %v1247_v53, %v1247_v53 }
   0xd   :  { %v122_v8 = vsel %vm49_vm0, %v1274_v6, 0.0  ;;  %v74_v9 = vsel %vm49_vm0, %v1279_v7, 0.0  ;;  %v125_v12 = vsel %vm49_vm0, %v1288_v10, 0.0  ;;  %v77_v13 = vsel %vm49_vm0, %v1293_v11, 0.0 }
   0xe   :  { %v260_v60 = vsel %vm49_vm0, %v232_v58, 0.0  ;;  %v196_v61 = vsel %vm49_vm0, %v168_v59, 0.0  ;;  %v263_v3 = vsel %vm49_vm0, %v233_v62, 0.0  ;;  %v199_v4 = vsel %vm49_vm0, %v169_v63, 0.0 }
   0xf   :  { %246 = vadd.xlane.f32.xlu1 %v245_v14  ;;  %182 = vadd.xlane.f32.xlu0 %v181_v15  ;;  %v234_v14 = vmul.f32 %v1274_v6, %v1274_v6  ;;  %v170_v15 = vmul.f32 %v1279_v7, %v1279_v7  ;;  %v239_v62 = vmul.f32 %v1368_v54, %v1368_v54 }
  0x10   :  { %v175_v63 = vmul.f32 %v1373_v55, %v1373_v55 }
  0x13   :  { %105 = vadd.xlane.f32.xlu1 %v104_v18  ;;  %57 = vadd.xlane.f32.xlu0 %v56_v19  ;;  %v266_v18 = vsel %vm49_vm0, %v234_v14, 0.0  ;;  %v202_v19 = vsel %vm49_vm0, %v170_v15, 0.0  ;;  %v1408_v14 = vld [vmem:[%s1635_s0 + $0xf8] sm:$0xff]  ;;  %v1413_v15 = vld [vmem:[%s1635_s0 + $0xf0] sm:$0xff] }
  0x17   :  { %108 = vadd.xlane.f32.xlu1 %v107_v22  ;;  %60 = vadd.xlane.f32.xlu0 %v59_v23  ;;  %v235_v22 = vmul.f32 %v1288_v10, %v1288_v10  ;;  %v171_v23 = vmul.f32 %v1293_v11, %v1293_v11 }
  0x19   :  { %v269_v24 = vsel %vm49_vm0, %v235_v22, 0.0  ;;  %v205_v25 = vsel %vm49_vm0, %v171_v23, 0.0 }
  0x1b   :  { %249 = vadd.xlane.f32.xlu1 %v248_v26  ;;  %185 = vadd.xlane.f32.xlu0 %v184_v27  ;;  %v1314_v26 = vld [vmem:[%s1635_s0 + $0xa8] sm:$0xff]  ;;  %v1319_v27 = vld [vmem:[%s1635_s0 + $0xa0] sm:$0xff] }
  0x1c   :  { %v128_v28 = vsel %vm49_vm0, %v1314_v26, 0.0  ;;  %v80_v29 = vsel %vm49_vm0, %v1319_v27, 0.0 }
  0x1f   :  { %252 = vadd.xlane.f32.xlu1 %v251_v30  ;;  %188 = vadd.xlane.f32.xlu0 %v187_v31  ;;  %v1328_v30 = vld [vmem:[%s1635_s0 + $0xb8] sm:$0xff]  ;;  %v1333_v31 = vld [vmem:[%s1635_s0 + $0xb0] sm:$0xff] }
  0x23   :  { %111 = vadd.xlane.f32.xlu1 %v110_v34  ;;  %63 = vadd.xlane.f32.xlu0 %v62_v35  ;;  %v131_v34 = vsel %vm49_vm0, %v1328_v30, 0.0  ;;  %v83_v35 = vsel %vm49_vm0, %v1333_v31, 0.0 }
  0x27   :  { %114 = vadd.xlane.f32.xlu1 %v113_v38  ;;  %66 = vadd.xlane.f32.xlu0 %v65_v39  ;;  %v236_v38 = vmul.f32 %v1314_v26, %v1314_v26  ;;  %v172_v39 = vmul.f32 %v1319_v27, %v1319_v27 }
  0x29   :  { %v272_v40 = vsel %vm49_vm0, %v236_v38, 0.0  ;;  %v208_v41 = vsel %vm49_vm0, %v172_v39, 0.0 }
  0x2b   :  { %255 = vadd.xlane.f32.xlu1 %v254_v42  ;;  %191 = vadd.xlane.f32.xlu0 %v190_v43  ;;  %v237_v42 = vmul.f32 %v1328_v30, %v1328_v30  ;;  %v173_v43 = vmul.f32 %v1333_v31, %v1333_v31 }
  0x2d   :  { %v275_v44 = vsel %vm49_vm0, %v237_v42, 0.0  ;;  %v211_v45 = vsel %vm49_vm0, %v173_v43, 0.0 }
  0x2f   :  { %258 = vadd.xlane.f32.xlu1 %v257_v46  ;;  %194 = vadd.xlane.f32.xlu0 %v193_v47  ;;  %v1354_v46 = vld [vmem:[%s1635_s0 + $0xc8] sm:$0xff]  ;;  %v1359_v47 = vld [vmem:[%s1635_s0 + $0xc0] sm:$0xff] }
  0x30   :  { %v238_v58 = vmul.f32 %v1354_v46, %v1354_v46  ;;  %v174_v59 = vmul.f32 %v1359_v47, %v1359_v47 }
  0x33   :  { %117 = vadd.xlane.f32.xlu1 %v116_v50  ;;  %69 = vadd.xlane.f32.xlu0 %v68_v51  ;;  %v134_v50 = vsel %vm49_vm0, %v1354_v46, 0.0  ;;  %v86_v51 = vsel %vm49_vm0, %v1359_v47, 0.0 }
  0x37   :  { %120 = vadd.xlane.f32.xlu1 %v119_v56  ;;  %72 = vadd.xlane.f32.xlu0 %v71_v57  ;;  %v137_v56 = vsel %vm49_vm0, %v1368_v54, 0.0  ;;  %v89_v57 = vsel %vm49_vm0, %v1373_v55, 0.0 }
  0x3b   :  { %261 = vadd.xlane.f32.xlu1 %v260_v60  ;;  %197 = vadd.xlane.f32.xlu0 %v196_v61  ;;  %v278_v60 = vsel %vm49_vm0, %v238_v58, 0.0  ;;  %v214_v61 = vsel %vm49_vm0, %v174_v59, 0.0 }
  0x3f   :  { %264 = vadd.xlane.f32.xlu1 %v263_v3  ;;  %200 = vadd.xlane.f32.xlu0 %v199_v4  ;;  %v281_v3 = vsel %vm49_vm0, %v239_v62, 0.0  ;;  %v217_v4 = vsel %vm49_vm0, %v175_v63, 0.0 }
  0x43   :  { %123 = vadd.xlane.f32.xlu1 %v122_v8  ;;  %75 = vadd.xlane.f32.xlu0 %v74_v9  ;;  %v1394_v8 = vld [vmem:[%s1635_s0 + $0xe8] sm:$0xff]  ;;  %v1399_v9 = vld [vmem:[%s1635_s0 + $0xe0] sm:$0xff] }
  0x44   :  { %v240_v22 = vmul.f32 %v1394_v8, %v1394_v8  ;;  %v176_v23 = vmul.f32 %v1399_v9, %v1399_v9 }
  0x47   :  { %126 = vadd.xlane.f32.xlu1 %v125_v12  ;;  %78 = vadd.xlane.f32.xlu0 %v77_v13  ;;  %v140_v12 = vsel %vm49_vm0, %v1394_v8, 0.0  ;;  %v92_v13 = vsel %vm49_vm0, %v1399_v9, 0.0 }
  0x4b   :  { %267 = vadd.xlane.f32.xlu1 %v266_v18  ;;  %203 = vadd.xlane.f32.xlu0 %v202_v19  ;;  %v143_v18 = vsel %vm49_vm0, %v1408_v14, 0.0  ;;  %v95_v19 = vsel %vm49_vm0, %v1413_v15, 0.0 }
  0x4f   :  { %270 = vadd.xlane.f32.xlu1 %v269_v24  ;;  %206 = vadd.xlane.f32.xlu0 %v205_v25  ;;  %v284_v24 = vsel %vm49_vm0, %v240_v22, 0.0  ;;  %v220_v25 = vsel %vm49_vm0, %v176_v23, 0.0 }
  0x53   :  { %129 = vadd.xlane.f32.xlu1 %v128_v28  ;;  %81 = vadd.xlane.f32.xlu0 %v80_v29  ;;  %v241_v28 = vmul.f32 %v1408_v14, %v1408_v14  ;;  %v177_v29 = vmul.f32 %v1413_v15, %v1413_v15 }
  0x57   :  { %132 = vadd.xlane.f32.xlu1 %v131_v34  ;;  %84 = vadd.xlane.f32.xlu0 %v83_v35  ;;  %v287_v34 = vsel %vm49_vm0, %v241_v28, 0.0  ;;  %v223_v35 = vsel %vm49_vm0, %v177_v29, 0.0 }
  0x5b   :  { %273 = vadd.xlane.f32.xlu1 %v272_v40  ;;  %209 = vadd.xlane.f32.xlu0 %v208_v41 }
  0x5f   :  { %276 = vadd.xlane.f32.xlu1 %v275_v44  ;;  %212 = vadd.xlane.f32.xlu0 %v211_v45 }
  0x63   :  { %135 = vadd.xlane.f32.xlu1 %v134_v50  ;;  %87 = vadd.xlane.f32.xlu0 %v86_v51 }
  0x67   :  { %138 = vadd.xlane.f32.xlu1 %v137_v56  ;;  %90 = vadd.xlane.f32.xlu0 %v89_v57 }
  0x6b   :  { %279 = vadd.xlane.f32.xlu1 %v278_v60  ;;  %215 = vadd.xlane.f32.xlu0 %v214_v61 }
  0x6f   :  { %282 = vadd.xlane.f32.xlu1 %v281_v3  ;;  %218 = vadd.xlane.f32.xlu0 %v217_v4 }
  0x73   :  { %141 = vadd.xlane.f32.xlu1 %v140_v12  ;;  %93 = vadd.xlane.f32.xlu0 %v92_v13 }
  0x77   :  { %144 = vadd.xlane.f32.xlu1 %v143_v18  ;;  %96 = vadd.xlane.f32.xlu0 %v95_v19 }
  0x7b   :  { %285 = vadd.xlane.f32.xlu1 %v284_v24  ;;  %221 = vadd.xlane.f32.xlu0 %v220_v25 }
  0x7f   :  { %288 = vadd.xlane.f32.xlu1 %v287_v34  ;;  %224 = vadd.xlane.f32.xlu0 %v223_v35 }
  0x8c   :  { %v55_v38 = vpop.xlane.xlu1 %54  ;;  %v52_v39 = vpop.xlane.xlu0 %51 }
  0x90   :  { %v103_v40 = vpop.xlane.xlu1 %102  ;;  %v100_v41 = vpop.xlane.xlu0 %99 }
  0x91   :  { %v146_v42 = vadd.f32 %v100_v41, %v52_v39  ;;  %v147_v43 = vadd.f32 %v103_v40, %v55_v38 }
  0x93   :  { %v306_v44 = vmul.f32 0.0625, %v146_v42  ;;  %v307_v56 = vmul.f32 0.0625, %v147_v43 }
  0x94   :  { %v244_v45 = vpop.xlane.xlu1 %243  ;;  %v180_v50 = vpop.xlane.xlu0 %179 }
  0x95   :  { %v290_v51 = vadd.f32 %v244_v45, %v180_v50  ;;  %v338_v57 = vmul.f32 %v306_v44, %v306_v44  ;;  %v339_v63 = vmul.f32 %v307_v56, %v307_v56 }
  0x97   :  { %v322_v58 = vmul.f32 0.0625, %v290_v51 }
  0x98   :  { %v247_v59 = vpop.xlane.xlu1 %246  ;;  %v183_v60 = vpop.xlane.xlu0 %182 }
  0x99   :  { %v354_v61 = vsub.f32 %v322_v58, %v338_v57  ;;  %v291_v62 = vadd.f32 %v247_v59, %v183_v60 }
  0x9b   :  { %v370_v3 = vmax.f32 %v354_v61, 0.0  ;;  %v323_v4 = vmul.f32 0.0625, %v291_v62 }
  0x9c   :  { %v106_v12 = vpop.xlane.xlu1 %105  ;;  %v58_v13 = vpop.xlane.xlu0 %57 }
  0x9d   :  { %v386_v18 = vadd.f32 1e-05, %v370_v3  ;;  %v355_v19 = vsub.f32 %v323_v4, %v339_v63  ;;  %v148_v23 = vadd.f32 %v106_v12, %v58_v13 }
  0x9f   :  { %1048 = vrsqrt.f32 %v386_v18  ;;  %v371_v22 = vmax.f32 %v355_v19, 0.0  ;;  %v308_v29 = vmul.f32 0.0625, %v148_v23 }
  0xa0   :  { %v109_v24 = vpop.xlane.xlu1 %108  ;;  %v61_v25 = vpop.xlane.xlu0 %60 }
  0xa1   :  { %v387_v28 = vadd.f32 1e-05, %v371_v22  ;;  %v149_v34 = vadd.f32 %v109_v24, %v61_v25  ;;  %v340_v40 = vmul.f32 %v308_v29, %v308_v29 }
  0xa3   :  { %1050 = vrsqrt.f32 %v387_v28  ;;  %v1431_v41 = vmul.f32 0.0625, %v149_v34 }
  0xa4   :  { %v250_v35 = vpop.xlane.xlu1 %249  ;;  %v186_v38 = vpop.xlane.xlu0 %185 }
  0xa5   :  { %v292_v39 = vadd.f32 %v250_v35, %v186_v38  ;;  %v341_v57 = vmul.f32 %v1431_v41, %v1431_v41 }
  0xa7   :  { %v324_v42 = vmul.f32 0.0625, %v292_v39 }
  0xa8   :  { %v253_v43 = vpop.xlane.xlu1 %252  ;;  %v189_v45 = vpop.xlane.xlu0 %188 }
  0xa9   :  { %v356_v50 = vsub.f32 %v324_v42, %v340_v40  ;;  %v293_v51 = vadd.f32 %v253_v43, %v189_v45 }
  0xab   :  { %v372_v58 = vmax.f32 %v356_v50, 0.0  ;;  %v325_v59 = vmul.f32 0.0625, %v293_v51 }
  0xac   :  { %v1049_v60 = vpop.eup %1048  ;;  %v112_v61 = vpop.xlane.xlu1 %111 }
  0xad   :  { %v64_v62 = vpop.xlane.xlu0 %63  ;;  %v388_v63 = vadd.f32 1e-05, %v372_v58  ;;  %v357_v3 = vsub.f32 %v325_v59, %v341_v57  ;;  %v418_v4 = vmul.f32 %v1049_v60, %v306_v44  ;;  %v466_v12 = vmul.f32 %v1049_v60, %v1127_v5 }
  0xae   :  { %v434_v13 = vmul.f32 %v1049_v60, %v1113_v1  ;;  %v150_v19 = vadd.f32 %v112_v61, %v64_v62 }
  0xaf   :  { %1052 = vrsqrt.f32 %v388_v63  ;;  %v373_v18 = vmax.f32 %v357_v3, 0.0  ;;  %v482_v25 = vsub.f32 %v466_v12, %v418_v4 }
  0xb0   :  { %v1051_v22 = vpop.eup %1050  ;;  %v115_v23 = vpop.xlane.xlu1 %114  ;;  %v450_v28 = vsub.f32 %v434_v13, %v418_v4  ;;  %v1441_v1 = vmul.f32 0.0625, %v150_v19 }
  0xb1   :  { %v67_v24 = vpop.xlane.xlu0 %66  ;;  %v389_v34 = vadd.f32 1e-05, %v373_v18  ;;  %v419_v35 = vmul.f32 %v1051_v22, %v307_v56  ;;  %998 = vmatprep.mubr.msk.f32.mxu0 %vm49_vm0, %v482_v25  ;;  %v467_v44 = vmul.f32 %v1051_v22, %v1118_v2  ;;  %v435_v5 = vmul.f32 %v1051_v22, %v1108_v0 }
  0xb2   :  { %1024 = vmatprep.mubr.msk.f32.mxu1 %vm49_vm0, %v450_v28  ;;  %v151_v38 = vadd.f32 %v115_v23, %v67_v24  ;;  %v342_v56 = vmul.f32 %v1441_v1, %v1441_v1 }
  0xb3   :  { %1054 = vrsqrt.f32 %v389_v34  ;;  %v483_v42 = vsub.f32 %v467_v44, %v419_v35  ;;  %v451_v43 = vsub.f32 %v435_v5, %v419_v35 }
  0xb4   :  { %v256_v39 = vpop.xlane.xlu1 %255  ;;  %v1447_v50 = vmul.f32 0.0625, %v151_v38 }
  0xb5   :  { %v192_v40 = vpop.xlane.xlu0 %191  ;;  %999 = vmatmul.mubr.msk.f32.vlgmr.msra.gmra.mxu0 %vm49_vm0, %v483_v42  ;;  %1025 = vmatmul.mubr.msk.f32.vlgmr.msra.gmra.mxu1 %vm49_vm0, %v451_v43 }
  0xb6   :  { %v294_v45 = vadd.f32 %v256_v39, %v192_v40  ;;  %v343_v59 = vmul.f32 %v1447_v50, %v1447_v50 }
  0xb8   :  { %v326_v2 = vmul.f32 0.0625, %v294_v45  ;;  %v259_v0 = vpop.xlane.xlu1 %258 }
  0xb9   :  { %v195_v51 = vpop.xlane.xlu0 %194 }
  0xba   :  { %v358_v57 = vsub.f32 %v326_v2, %v342_v56  ;;  %v295_v58 = vadd.f32 %v259_v0, %v195_v51 }
  0xbc   :  { %v374_v60 = vmax.f32 %v358_v57, 0.0  ;;  %v327_v61 = vmul.f32 0.0625, %v295_v58  ;;  %v1053_v62 = vpop.eup %1052  ;;  %v118_v63 = vpop.xlane.xlu1 %117 }
  0xbd   :  { %v70_v3 = vpop.xlane.xlu0 %69  ;;  %v420_v13 = vmul.f32 %v1053_v62, %v308_v29  ;;  %v468_v18 = vmul.f32 %v1053_v62, %v1148_v16  ;;  %v436_v19 = vmul.f32 %v1053_v62, %v1153_v17 }
  0xbe   :  { %v390_v4 = vadd.f32 1e-05, %v374_v60  ;;  %v359_v12 = vsub.f32 %v327_v61, %v343_v59  ;;  %v152_v23 = vadd.f32 %v118_v63, %v70_v3 }
  0xbf   :  { %v484_v34 = vsub.f32 %v468_v18, %v420_v13  ;;  %v452_v35 = vsub.f32 %v436_v19, %v420_v13 }
  0xc0   :  { %1056 = vrsqrt.f32 %v390_v4  ;;  %v375_v22 = vmax.f32 %v359_v12, 0.0  ;;  %v1055_v24 = vpop.eup %1054  ;;  %v121_v25 = vpop.xlane.xlu1 %120  ;;  %v1458_v17 = vmul.f32 0.0625, %v152_v23 }
  0xc1   :  { %v73_v28 = vpop.xlane.xlu0 %72  ;;  %v421_v5 = vmul.f32 %v1055_v24, %v1431_v41  ;;  %1001 = vmatprep.mubr.msk.f32.mxu0 %vm49_vm0, %v484_v34  ;;  %1027 = vmatprep.mubr.msk.f32.mxu1 %vm49_vm0, %v452_v35  ;;  %v469_v29 = vmul.f32 %v1055_v24, %v1162_v20  ;;  %v437_v16 = vmul.f32 %v1055_v24, %v1167_v21 }
  0xc2   :  { %v391_v44 = vadd.f32 1e-05, %v375_v22  ;;  %v153_v38 = vadd.f32 %v121_v25, %v73_v28  ;;  %v344_v41 = vmul.f32 %v1458_v17, %v1458_v17 }
  0xc3   :  { %v485_v42 = vsub.f32 %v469_v29, %v421_v5  ;;  %v453_v43 = vsub.f32 %v437_v16, %v421_v5 }
  0xc4   :  { %1058 = vrsqrt.f32 %v391_v44  ;;  %v262_v39 = vpop.xlane.xlu1 %261  ;;  %v1464_v56 = vmul.f32 0.0625, %v153_v38 }
  0xc5   :  { %v198_v40 = vpop.xlane.xlu0 %197  ;;  %1002 = vmatmul.mubr.msk.f32.gmra.mxu0 %vm49_vm0, %v485_v42  ;;  %1028 = vmatmul.mubr.msk.f32.gmra.mxu1 %vm49_vm0, %v453_v43 }
  0xc6   :  { %v296_v45 = vadd.f32 %v262_v39, %v198_v40  ;;  %v345_v57 = vmul.f32 %v1464_v56, %v1464_v56 }
  0xc8   :  { %v328_v20 = vmul.f32 0.0625, %v296_v45  ;;  %v265_v21 = vpop.xlane.xlu1 %264 }
  0xc9   :  { %v201_v2 = vpop.xlane.xlu0 %200 }
  0xca   :  { %v360_v0 = vsub.f32 %v328_v20, %v344_v41  ;;  %v297_v51 = vadd.f32 %v265_v21, %v201_v2 }
  0xcc   :  { %v376_v58 = vmax.f32 %v360_v0, 0.0  ;;  %v329_v59 = vmul.f32 0.0625, %v297_v51  ;;  %v124_v61 = vpop.xlane.xlu1 %123 }
  0xcd   :  { %v1057_v60 = vpop.eup %1056  ;;  %v76_v62 = vpop.xlane.xlu0 %75 }
  0xce   :  { %v392_v63 = vadd.f32 1e-05, %v376_v58  ;;  %v361_v3 = vsub.f32 %v329_v59, %v345_v57  ;;  %v422_v4 = vmul.f32 %v1057_v60, %v1441_v1  ;;  %v470_v12 = vmul.f32 %v1057_v60, %v1188_v32 }
  0xcf   :  { %v438_v13 = vmul.f32 %v1057_v60, %v1193_v33  ;;  %v154_v19 = vadd.f32 %v124_v61, %v76_v62 }
  0xd0   :  { %1060 = vrsqrt.f32 %v392_v63  ;;  %v377_v18 = vmax.f32 %v361_v3, 0.0  ;;  %v127_v23 = vpop.xlane.xlu1 %126  ;;  %v486_v25 = vsub.f32 %v470_v12, %v422_v4 }
  0xd1   :  { %v1059_v22 = vpop.eup %1058  ;;  %v79_v24 = vpop.xlane.xlu0 %78  ;;  %v454_v28 = vsub.f32 %v438_v13, %v422_v4  ;;  %v1476_v33 = vmul.f32 0.0625, %v154_v19 }
  0xd2   :  { %v393_v34 = vadd.f32 1e-05, %v377_v18  ;;  %v423_v35 = vmul.f32 %v1059_v22, %v1447_v50  ;;  %1004 = vmatprep.mubr.msk.f32.mxu0 %vm49_vm0, %v486_v25  ;;  %v471_v1 = vmul.f32 %v1059_v22, %v1202_v36  ;;  %v439_v32 = vmul.f32 %v1059_v22, %v1207_v37 }
  0xd3   :  { %1030 = vmatprep.mubr.msk.f32.mxu1 %vm49_vm0, %v454_v28  ;;  %v155_v44 = vadd.f32 %v127_v23, %v79_v24  ;;  %v346_v50 = vmul.f32 %v1476_v33, %v1476_v33 }
  0xd4   :  { %1062 = vrsqrt.f32 %v393_v34  ;;  %v268_v5 = vpop.xlane.xlu1 %267  ;;  %v487_v16 = vsub.f32 %v471_v1, %v423_v35  ;;  %v455_v38 = vsub.f32 %v439_v32, %v423_v35 }
  0xd5   :  { %v204_v29 = vpop.xlane.xlu0 %203  ;;  %v1482_v40 = vmul.f32 0.0625, %v155_v44 }
  0xd6   :  { %v298_v39 = vadd.f32 %v268_v5, %v204_v29  ;;  %1005 = vmatmul.mubr.msk.f32.gmra.mxu0 %vm49_vm0, %v487_v16  ;;  %1031 = vmatmul.mubr.msk.f32.gmra.mxu1 %vm49_vm0, %v455_v38 }
  0xd7   :  { %v347_v41 = vmul.f32 %v1482_v40, %v1482_v40 }
  0xd8   :  { %v330_v36 = vmul.f32 0.0625, %v298_v39  ;;  %v271_v37 = vpop.xlane.xlu1 %270 }
  0xd9   :  { %v207_v42 = vpop.xlane.xlu0 %206 }
  0xda   :  { %v362_v43 = vsub.f32 %v330_v36, %v346_v50  ;;  %v299_v45 = vadd.f32 %v271_v37, %v207_v42 }
  0xdc   :  { %v378_v20 = vmax.f32 %v362_v43, 0.0  ;;  %v331_v21 = vmul.f32 0.0625, %v299_v45  ;;  %v130_v0 = vpop.xlane.xlu1 %129 }
  0xdd   :  { %v1061_v2 = vpop.eup %1060  ;;  %v82_v51 = vpop.xlane.xlu0 %81 }
  0xde   :  { %v394_v57 = vadd.f32 1e-05, %v378_v20  ;;  %v363_v58 = vsub.f32 %v331_v21, %v347_v41  ;;  %v424_v59 = vmul.f32 %v1061_v2, %v1458_v17  ;;  %v472_v60 = vmul.f32 %v1061_v2, %v1228_v48 }
  0xdf   :  { %v440_v61 = vmul.f32 %v1061_v2, %v1233_v49  ;;  %v156_v63 = vadd.f32 %v130_v0, %v82_v51 }
  0xe0   :  { %1064 = vrsqrt.f32 %v394_v57  ;;  %v379_v62 = vmax.f32 %v363_v58, 0.0  ;;  %v133_v4 = vpop.xlane.xlu1 %132  ;;  %v488_v13 = vsub.f32 %v472_v60, %v424_v59 }
  0xe1   :  { %v1063_v3 = vpop.eup %1062  ;;  %v85_v12 = vpop.xlane.xlu0 %84  ;;  %v456_v18 = vsub.f32 %v440_v61, %v424_v59  ;;  %v1494_v49 = vmul.f32 0.0625, %v156_v63 }
  0xe2   :  { %v395_v19 = vadd.f32 1e-05, %v379_v62  ;;  %v425_v22 = vmul.f32 %v1063_v3, %v1464_v56  ;;  %1007 = vmatprep.mubr.msk.f32.mxu0 %vm49_vm0, %v488_v13  ;;  %v473_v17 = vmul.f32 %v1063_v3, %v1242_v52  ;;  %v441_v48 = vmul.f32 %v1063_v3, %v1247_v53 }
  0xe3   :  { %1033 = vmatprep.mubr.msk.f32.mxu1 %vm49_vm0, %v456_v18  ;;  %v157_v23 = vadd.f32 %v133_v4, %v85_v12  ;;  %v348_v56 = vmul.f32 %v1494_v49, %v1494_v49 }
  0xe4   :  { %1066 = vrsqrt.f32 %v395_v19  ;;  %v274_v24 = vpop.xlane.xlu1 %273  ;;  %v489_v28 = vsub.f32 %v473_v17, %v425_v22  ;;  %v457_v34 = vsub.f32 %v441_v48, %v425_v22 }
  0xe5   :  { %v210_v25 = vpop.xlane.xlu0 %209  ;;  %v1500_v1 = vmul.f32 0.0625, %v157_v23 }
  0xe6   :  { %v300_v35 = vadd.f32 %v274_v24, %v210_v25  ;;  %1008 = vmatmul.mubr.msk.f32.gmra.mxu0 %vm49_vm0, %v489_v28  ;;  %1034 = vmatmul.mubr.msk.f32.gmra.mxu1 %vm49_vm0, %v457_v34 }
  0xe7   :  { %v349_v29 = vmul.f32 %v1500_v1, %v1500_v1 }
  0xe8   :  { %v332_v52 = vmul.f32 0.0625, %v300_v35  ;;  %v277_v53 = vpop.xlane.xlu1 %276 }
  0xe9   :  { %v213_v32 = vpop.xlane.xlu0 %212 }
  0xea   :  { %v364_v44 = vsub.f32 %v332_v52, %v348_v56  ;;  %v301_v5 = vadd.f32 %v277_v53, %v213_v32 }
  0xec   :  { %v380_v16 = vmax.f32 %v364_v44, 0.0  ;;  %v333_v38 = vmul.f32 0.0625, %v301_v5  ;;  %v136_v50 = vpop.xlane.xlu1 %135 }
  0xed   :  { %v1065_v39 = vpop.eup %1064  ;;  %v88_v36 = vpop.xlane.xlu0 %87 }
  0xee   :  { %v396_v37 = vadd.f32 1e-05, %v380_v16  ;;  %v365_v42 = vsub.f32 %v333_v38, %v349_v29  ;;  %v426_v43 = vmul.f32 %v1065_v39, %v1476_v33  ;;  %v474_v45 = vmul.f32 %v1065_v39, %v1274_v6 }
  0xef   :  { %v442_v41 = vmul.f32 %v1065_v39, %v1279_v7  ;;  %v158_v21 = vadd.f32 %v136_v50, %v88_v36 }
  0xf0   :  { %1068 = vrsqrt.f32 %v396_v37  ;;  %v381_v20 = vmax.f32 %v365_v42, 0.0  ;;  %v139_v0 = vpop.xlane.xlu1 %138  ;;  %v490_v57 = vsub.f32 %v474_v45, %v426_v43 }
  0xf1   :  { %v1067_v2 = vpop.eup %1066  ;;  %v91_v51 = vpop.xlane.xlu0 %90  ;;  %v458_v58 = vsub.f32 %v442_v41, %v426_v43  ;;  %v1512_v7 = vmul.f32 0.0625, %v158_v21 }
  0xf2   :  { %v397_v59 = vadd.f32 1e-05, %v381_v20  ;;  %v427_v60 = vmul.f32 %v1067_v2, %v1482_v40  ;;  %1010 = vmatprep.mubr.msk.f32.mxu0 %vm49_vm0, %v490_v57  ;;  %v475_v33 = vmul.f32 %v1067_v2, %v1288_v10  ;;  %v443_v6 = vmul.f32 %v1067_v2, %v1293_v11 }
  0xf3   :  { %1036 = vmatprep.mubr.msk.f32.mxu1 %vm49_vm0, %v458_v58  ;;  %v159_v61 = vadd.f32 %v139_v0, %v91_v51  ;;  %v350_v40 = vmul.f32 %v1512_v7, %v1512_v7 }
  0xf4   :  { %1070 = vrsqrt.f32 %v397_v59  ;;  %v280_v62 = vpop.xlane.xlu1 %279  ;;  %v491_v3 = vsub.f32 %v475_v33, %v427_v60  ;;  %v459_v4 = vsub.f32 %v443_v6, %v427_v60 }
  0xf5   :  { %v216_v63 = vpop.xlane.xlu0 %215  ;;  %v1518_v13 = vmul.f32 0.0625, %v159_v61 }
  0xf6   :  { %v302_v12 = vadd.f32 %v280_v62, %v216_v63  ;;  %1011 = vmatmul.mubr.msk.f32.gmra.mxu0 %vm49_vm0, %v491_v3  ;;  %1037 = vmatmul.mubr.msk.f32.gmra.mxu1 %vm49_vm0, %v459_v4 }
  0xf7   :  { %v351_v17 = vmul.f32 %v1518_v13, %v1518_v13 }
  0xf8   :  { %v334_v10 = vmul.f32 0.0625, %v302_v12  ;;  %v283_v11 = vpop.xlane.xlu1 %282 }
  0xf9   :  { %v219_v18 = vpop.xlane.xlu0 %218 }
  0xfa   :  { %v366_v19 = vsub.f32 %v334_v10, %v350_v40  ;;  %v303_v22 = vadd.f32 %v283_v11, %v219_v18 }
  0xfc   :  { %v382_v48 = vmax.f32 %v366_v19, 0.0  ;;  %v335_v23 = vmul.f32 0.0625, %v303_v22  ;;  %v142_v25 = vpop.xlane.xlu1 %141 }
  0xfd   :  { %v1069_v24 = vpop.eup %1068  ;;  %v94_v28 = vpop.xlane.xlu0 %93 }
  0xfe   :  { %v398_v34 = vadd.f32 1e-05, %v382_v48  ;;  %v367_v35 = vsub.f32 %v335_v23, %v351_v17  ;;  %v428_v56 = vmul.f32 %v1069_v24, %v1494_v49  ;;  %v476_v52 = vmul.f32 %v1069_v24, %v1314_v26 }
  0xff   :  { %v444_v53 = vmul.f32 %v1069_v24, %v1319_v27  ;;  %v160_v44 = vadd.f32 %v142_v25, %v94_v28 }
 0x100   :  { %1072 = vrsqrt.f32 %v398_v34  ;;  %v383_v32 = vmax.f32 %v367_v35, 0.0  ;;  %v145_v29 = vpop.xlane.xlu1 %144  ;;  %v492_v38 = vsub.f32 %v476_v52, %v428_v56  ;;  %v1553_v35 = vld [vmem:[%s1638_s3] ss:$0 sm:$0xff] }
 0x101   :  { %v1071_v5 = vpop.eup %1070  ;;  %v97_v16 = vpop.xlane.xlu0 %96  ;;  %v460_v39 = vsub.f32 %v444_v53, %v428_v56  ;;  %v320_v27 = vmul.f32 0.0625, %v160_v44 }
 0x102   :  { %v399_v50 = vadd.f32 1e-05, %v383_v32  ;;  %v429_v36 = vmul.f32 %v1071_v5, %v1500_v1  ;;  %1013 = vmatprep.mubr.msk.f32.mxu0 %vm49_vm0, %v492_v38  ;;  %v477_v49 = vmul.f32 %v1071_v5, %v1328_v30  ;;  %v445_v26 = vmul.f32 %v1071_v5, %v1333_v31 }
 0x103   :  { %1039 = vmatprep.mubr.msk.f32.mxu1 %vm49_vm0, %v460_v39  ;;  %v161_v37 = vadd.f32 %v145_v29, %v97_v16  ;;  %v352_v1 = vmul.f32 %v320_v27, %v320_v27 }
 0x104   :  { %1074 = vrsqrt.f32 %v399_v50  ;;  %v286_v42 = vpop.xlane.xlu1 %285  ;;  %v493_v45 = vsub.f32 %v477_v49, %v429_v36  ;;  %v461_v41 = vsub.f32 %v445_v26, %v429_v36 }
 0x105   :  { %v222_v43 = vpop.xlane.xlu0 %221  ;;  %v321_v21 = vmul.f32 0.0625, %v161_v37 }
 0x106   :  { %v304_v20 = vadd.f32 %v286_v42, %v222_v43  ;;  %1014 = vmatmul.mubr.msk.f32.gmra.mxu0 %vm49_vm0, %v493_v45  ;;  %1040 = vmatmul.mubr.msk.f32.gmra.mxu1 %vm49_vm0, %v461_v41 }
 0x107   :  { %v353_v31 = vmul.f32 %v321_v21, %v321_v21 }
 0x108   :  { %v336_v2 = vmul.f32 0.0625, %v304_v20  ;;  %v289_v0 = vpop.xlane.xlu1 %288 }
 0x109   :  { %v225_v51 = vpop.xlane.xlu0 %224 }
 0x10a   :  { %v368_v30 = vsub.f32 %v336_v2, %v352_v1  ;;  %v305_v57 = vadd.f32 %v289_v0, %v225_v51 }
 0x10c   :  { %v384_v58 = vmax.f32 %v368_v30, 0.0  ;;  %v337_v59 = vmul.f32 0.0625, %v305_v57 }
 0x10d   :  { %v1073_v60 = vpop.eup %1072 }
 0x10e   :  { %v400_v33 = vadd.f32 1e-05, %v384_v58  ;;  %v369_v6 = vsub.f32 %v337_v59, %v353_v31  ;;  %v430_v61 = vmul.f32 %v1073_v60, %v1512_v7  ;;  %v478_v62 = vmul.f32 %v1073_v60, %v1354_v46 }
 0x10f   :  { %v446_v63 = vmul.f32 %v1073_v60, %v1359_v47 }
 0x110   :  { %1076 = vrsqrt.f32 %v400_v33  ;;  %v385_v3 = vmax.f32 %v369_v6, 0.0  ;;  %v494_v4 = vsub.f32 %v478_v62, %v430_v61 }
 0x111   :  { %v1075_v12 = vpop.eup %1074  ;;  %v462_v40 = vsub.f32 %v446_v63, %v430_v61 }
 0x112   :  { %v401_v10 = vadd.f32 1e-05, %v385_v3  ;;  %1016 = vmatprep.mubr.msk.f32.mxu0 %vm49_vm0, %v494_v4  ;;  %v431_v11 = vmul.f32 %v1075_v12, %v1518_v13  ;;  %v479_v18 = vmul.f32 %v1075_v12, %v1368_v54  ;;  %v447_v19 = vmul.f32 %v1075_v12, %v1373_v55 }
 0x113   :  { %1042 = vmatprep.mubr.msk.f32.mxu1 %vm49_vm0, %v462_v40 }
 0x114   :  { %1078 = vrsqrt.f32 %v401_v10  ;;  %v495_v46 = vsub.f32 %v479_v18, %v431_v11  ;;  %v463_v7 = vsub.f32 %v447_v19, %v431_v11 }
 0x116   :  { %1017 = vmatmul.mubr.msk.f32.gmra.mxu0 %vm49_vm0, %v495_v46  ;;  %1043 = vmatmul.mubr.msk.f32.gmra.mxu1 %vm49_vm0, %v463_v7 }
 0x11d   :  { %v1077_v47 = vpop.eup %1076 }
 0x11e   :  { %v432_v22 = vmul.f32 %v1077_v47, %v320_v27  ;;  %v480_v17 = vmul.f32 %v1077_v47, %v1394_v8  ;;  %v448_v48 = vmul.f32 %v1077_v47, %v1399_v9 }
 0x120   :  { %v496_v13 = vsub.f32 %v480_v17, %v432_v22  ;;  %v464_v23 = vsub.f32 %v448_v48, %v432_v22 }
 0x121   :  { %v1079_v54 = vpop.eup %1078 }
 0x122   :  { %1019 = vmatprep.mubr.msk.f32.mxu0 %vm49_vm0, %v496_v13  ;;  %1045 = vmatprep.mubr.msk.f32.mxu1 %vm49_vm0, %v464_v23  ;;  %v433_v55 = vmul.f32 %v1079_v54, %v321_v21  ;;  %v481_v24 = vmul.f32 %v1079_v54, %v1408_v14  ;;  %v449_v25 = vmul.f32 %v1079_v54, %v1413_v15 }
 0x124   :  { %v497_v28 = vsub.f32 %v481_v24, %v433_v55  ;;  %v465_v34 = vsub.f32 %v449_v25, %v433_v55 }
 0x126   :  { %1020 = vmatmul.mubr.msk.f32.gmra.mxu0 %vm49_vm0, %v497_v28  ;;  %1046 = vmatmul.mubr.msk.f32.gmra.mxu1 %vm49_vm0, %v465_v34 }
 0x175   :  { %v1000_v8 = vpop.f32.mrf.mxu0  ;;  %v1026_v9 = vpop.f32.mrf.mxu1 }
 0x176   :  { %v813_v56 = vadd.f32 %v1026_v9, %v1000_v8 }
 0x177   :  { %v614_v52 = vpop.f32.mrf.mxu0  ;;  %v807_v53 = vpop.f32.mrf.mxu1 }
 0x178   :  { %v894_v14 = vadd.f32 %v1553_v35, %v813_v56  ;;  %v808_v32 = vadd.f32 %v807_v53, %v614_v52 }
 0x17a   :  { %910 = vst.msk [vmem:[%s1639_s4 + $0x8] sm:$0xff] %vm49_vm0, %v894_v14  ;;  %v893_v15 = vadd.f32 %v1553_v35, %v808_v32 }
 0x17c   :  { %909 = vst.msk [vmem:[%s1639_s4] sm:$0xff] %vm49_vm0, %v893_v15 }
 0x185   :  { %v1003_v44 = vpop.f32.mrf.mxu0  ;;  %v1029_v5 = vpop.f32.mrf.mxu1 }
 0x186   :  { %v823_v29 = vadd.f32 %v1029_v5, %v1003_v44 }
 0x187   :  { %v624_v16 = vpop.f32.mrf.mxu0  ;;  %v817_v38 = vpop.f32.mrf.mxu1 }
 0x188   :  { %v896_v39 = vadd.f32 %v1553_v35, %v823_v29  ;;  %v818_v50 = vadd.f32 %v817_v38, %v624_v16 }
 0x18a   :  { %912 = vst.msk [vmem:[%s1639_s4 + $0x18] sm:$0xff] %vm49_vm0, %v896_v39  ;;  %v895_v36 = vadd.f32 %v1553_v35, %v818_v50 }
 0x18c   :  { %911 = vst.msk [vmem:[%s1639_s4 + $0x10] sm:$0xff] %vm49_vm0, %v895_v36 }
 0x196   :  { %v1006_v49 = vpop.f32.mrf.mxu0  ;;  %v1032_v26 = vpop.f32.mrf.mxu1 }
 0x197   :  { %v833_v27 = vadd.f32 %v1032_v26, %v1006_v49 }
 0x198   :  { %v634_v37 = vpop.f32.mrf.mxu0  ;;  %v827_v42 = vpop.f32.mrf.mxu1 }
 0x199   :  { %v898_v43 = vadd.f32 %v1553_v35, %v833_v27  ;;  %v828_v45 = vadd.f32 %v827_v42, %v634_v37 }
 0x19b   :  { %914 = vst.msk [vmem:[%s1639_s4 + $0x28] sm:$0xff] %vm49_vm0, %v898_v43  ;;  %v897_v41 = vadd.f32 %v1553_v35, %v828_v45 }
 0x19d   :  { %913 = vst.msk [vmem:[%s1639_s4 + $0x20] sm:$0xff] %vm49_vm0, %v897_v41 }
 0x1a6   :  { %v1009_v20 = vpop.f32.mrf.mxu0  ;;  %v1035_v1 = vpop.f32.mrf.mxu1 }
 0x1a7   :  { %v843_v21 = vadd.f32 %v1035_v1, %v1009_v20 }
 0x1a8   :  { %v644_v2 = vpop.f32.mrf.mxu0  ;;  %v837_v0 = vpop.f32.mrf.mxu1 }
 0x1a9   :  { %v900_v51 = vadd.f32 %v1553_v35, %v843_v21  ;;  %v838_v30 = vadd.f32 %v837_v0, %v644_v2 }
 0x1ab   :  { %916 = vst.msk [vmem:[%s1639_s4 + $0x38] sm:$0xff] %vm49_vm0, %v900_v51  ;;  %v899_v57 = vadd.f32 %v1553_v35, %v838_v30 }
 0x1ad   :  { %915 = vst.msk [vmem:[%s1639_s4 + $0x30] sm:$0xff] %vm49_vm0, %v899_v57 }
 0x1b6   :  { %v1012_v31 = vpop.f32.mrf.mxu0  ;;  %v1038_v58 = vpop.f32.mrf.mxu1 }
 0x1b7   :  { %v853_v59 = vadd.f32 %v1038_v58, %v1012_v31 }
 0x1b8   :  { %v654_v60 = vpop.f32.mrf.mxu0  ;;  %v847_v33 = vpop.f32.mrf.mxu1 }
 0x1b9   :  { %v902_v6 = vadd.f32 %v1553_v35, %v853_v59  ;;  %v848_v61 = vadd.f32 %v847_v33, %v654_v60 }
 0x1bb   :  { %918 = vst.msk [vmem:[%s1639_s4 + $0x48] sm:$0xff] %vm49_vm0, %v902_v6  ;;  %v901_v62 = vadd.f32 %v1553_v35, %v848_v61 }
 0x1bd   :  { %917 = vst.msk [vmem:[%s1639_s4 + $0x40] sm:$0xff] %vm49_vm0, %v901_v62 }
 0x1c6   :  { %v1015_v63 = vpop.f32.mrf.mxu0  ;;  %v1041_v3 = vpop.f32.mrf.mxu1 }
 0x1c7   :  { %v863_v4 = vadd.f32 %v1041_v3, %v1015_v63 }
 0x1c8   :  { %v664_v12 = vpop.f32.mrf.mxu0  ;;  %v857_v40 = vpop.f32.mrf.mxu1 }
 0x1c9   :  { %v904_v10 = vadd.f32 %v1553_v35, %v863_v4  ;;  %v858_v11 = vadd.f32 %v857_v40, %v664_v12 }
 0x1cb   :  { %920 = vst.msk [vmem:[%s1639_s4 + $0x58] sm:$0xff] %vm49_vm0, %v904_v10  ;;  %v903_v18 = vadd.f32 %v1553_v35, %v858_v11 }
 0x1cd   :  { %919 = vst.msk [vmem:[%s1639_s4 + $0x50] sm:$0xff] %vm49_vm0, %v903_v18 }
 0x1d6   :  { %v1018_v19 = vpop.f32.mrf.mxu0  ;;  %v1044_v46 = vpop.f32.mrf.mxu1 }
 0x1d7   :  { %v873_v7 = vadd.f32 %v1044_v46, %v1018_v19 }
 0x1d8   :  { %v674_v47 = vpop.f32.mrf.mxu0  ;;  %v867_v22 = vpop.f32.mrf.mxu1 }
 0x1d9   :  { %v906_v17 = vadd.f32 %v1553_v35, %v873_v7  ;;  %v868_v48 = vadd.f32 %v867_v22, %v674_v47 }
 0x1db   :  { %922 = vst.msk [vmem:[%s1639_s4 + $0x68] sm:$0xff] %vm49_vm0, %v906_v17  ;;  %v905_v13 = vadd.f32 %v1553_v35, %v868_v48 }
 0x1dd   :  { %921 = vst.msk [vmem:[%s1639_s4 + $0x60] sm:$0xff] %vm49_vm0, %v905_v13 }
 0x1e6   :  { %v1021_v23 = vpop.f32.mrf.mxu0  ;;  %v1047_v54 = vpop.f32.mrf.mxu1 }
 0x1e7   :  { %v883_v55 = vadd.f32 %v1047_v54, %v1021_v23 }
 0x1e8   :  { %v684_v24 = vpop.f32.mrf.mxu0  ;;  %v877_v25 = vpop.f32.mrf.mxu1 }
 0x1e9   :  { %v908_v28 = vadd.f32 %v1553_v35, %v883_v55  ;;  %v878_v34 = vadd.f32 %v877_v25, %v684_v24 }
 0x1eb   :  { %924 = vst.msk [vmem:[%s1639_s4 + $0x78] sm:$0xff] %vm49_vm0, %v908_v28  ;;  %v907_v8 = vadd.f32 %v1553_v35, %v878_v34 }
 0x1ed   :  { %923 = vst.msk [vmem:[%s1639_s4 + $0x70] sm:$0xff] %vm49_vm0, %v907_v8 }

</bundles_post_ra>
